<compile_context>
chip_gen: v7x
topology: tpu7x:2x2x1
jax: 0.10.0
libtpu: 0.0.40
codegen_flags: <defaults>
</compile_context>

<pallas_src>
import jax
import jax.numpy as jnp
from jax.experimental import pallas as pl
from jax.experimental.pallas import tpu as pltpu


def _make_conv1x1_kernel(compute_dtype):
    def kernel(x_ref, w_ref, o_ref):
        # x_ref: (C_in, HW)     one image; channels on sublanes, pixels on lanes
        # w_ref: (C_out, C_in)  full weight matrix (resident across the grid)
        # o_ref: (C_out, HW)
        x = x_ref[...]
        w = w_ref[...]
        if compute_dtype is not None:
            x = x.astype(compute_dtype)
            w = w.astype(compute_dtype)
        o_ref[...] = jnp.dot(
            w, x, preferred_element_type=jnp.float32
        ).astype(o_ref.dtype)

    return kernel


def conv2d_1x1(x_nchw, weight_oi, *, compute_dtype=None):
    """1x1 conv, stride 1, no bias.

    x_nchw:        (N, C_in, H, W)   float32
    weight_oi:     (C_out, C_in)     float32 (squeezed from (C_out, C_in, 1, 1))
    compute_dtype: None -> fp32 MXU operands (matches the fp32 module);
                   jnp.bfloat16 -> faster MXU path, looser numerics.
    returns:       (N, C_out, H, W)  float32
    """
    N, C_in, H, W = x_nchw.shape
    C_out = weight_oi.shape[0]
    HW = H * W

    # Free view: NCHW -> (N, C_in, H*W).  No transpose, no copy.
    x_flat = x_nchw.reshape(N, C_in, HW)

    flops = 2 * N * HW * C_in * C_out
    # Each tensor moves HBM<->VMEM exactly once (weight block index is
    # constant across the grid, so it is not re-copied).
    bytes_accessed = (
        x_flat.size * x_flat.dtype.itemsize
        + weight_oi.size * weight_oi.dtype.itemsize
        + N * C_out * HW * 4
    )

    out_flat = pl.pallas_call(
        _make_conv1x1_kernel(compute_dtype),
        out_shape=jax.ShapeDtypeStruct((N, C_out, HW), jnp.float32),
        grid=(N,),
        in_specs=[
            # Batch dim squeezed -> kernel sees (C_in, HW).
            pl.BlockSpec((None, C_in, HW), lambda n: (n, 0, 0)),
            # Full weight, constant block index -> DMA'd once, VMEM-resident.
            pl.BlockSpec((C_out, C_in), lambda n: (0, 0)),
        ],
        out_specs=pl.BlockSpec((None, C_out, HW), lambda n: (n, 0, 0)),
        compiler_params=pltpu.CompilerParams(
            dimension_semantics=("parallel",),
        ),
        cost_estimate=pl.CostEstimate(
            flops=flops, transcendentals=0, bytes_accessed=bytes_accessed
        ),
    )(x_flat, weight_oi)

    # Free view: (N, C_out, H*W) -> NCHW.
    return out_flat.reshape(N, C_out, H, W)


if __name__ == "__main__":
    key = jax.random.PRNGKey(0)
    kx, kw = jax.random.split(key)

    # Shapes implied by the module's forward: x71 = [1, 144, 28, 28]
    N, C_in, H, W = 1, 144, 28, 28
    C_out = 320

    x = jax.random.normal(kx, (N, C_in, H, W), dtype=jnp.float32)
    # Deterministic weight (Conv2d(144, 320, kernel_size=1, bias=False)).
    weight = jax.random.normal(kw, (C_out, C_in), dtype=jnp.float32) * 0.05

    out = conv2d_1x1(x, weight)  # fp32 path: matches the fp32 PyTorch module
    jax.block_until_ready(out)

    # Sanity check against plain-JAX reference.
    ref = jnp.einsum("nchw,oc->nohw", x, weight)
    assert out.shape == (N, C_out, H, W)
    assert jnp.allclose(out, ref, atol=1e-3, rtol=1e-3)

    print("KERNEL_OK")
</pallas_src>

<mosaic_0001>
module attributes {stable_mosaic.version = 11 : i64} {
  func.func @kernel(%arg0: i32, %arg1: memref<1x144x784xf32, #tpu.memory_space<vmem>>, %arg2: memref<320x144xf32, #tpu.memory_space<vmem>>, %arg3: memref<1x320x784xf32, #tpu.memory_space<vmem>>) attributes {dimension_semantics = [#tpu.dimension_semantics<parallel>], iteration_bounds = array<i64: 1>, scalar_prefetch = 0 : i64, scratch_operands = 0 : i64, tpu.core_type = #tpu.core_type<tc>, window_params = [{transform_indices = @transform_0, window_bounds = array<i64: 1, 144, 784>}, {pipeline_mode = #tpu.pipeline_mode<synchronous>, transform_indices = @transform_1, window_bounds = array<i64: 320, 144>}, {transform_indices = @transform_2, window_bounds = array<i64: 1, 320, 784>}]} {
    %c0 = arith.constant 0 : index
    %c0_0 = arith.constant 0 : index
    %c0_1 = arith.constant 0 : index
    %0 = vector.load %arg1[%c0, %c0_0, %c0_1] : memref<1x144x784xf32, #tpu.memory_space<vmem>>, vector<1x144x784xf32>
    %1 = vector.shape_cast %0 : vector<1x144x784xf32> to vector<144x784xf32>
    %c0_2 = arith.constant 0 : index
    %c0_3 = arith.constant 0 : index
    %2 = vector.load %arg2[%c0_2, %c0_3] : memref<320x144xf32, #tpu.memory_space<vmem>>, vector<320x144xf32>
    %cst = arith.constant dense<0.000000e+00> : vector<320x784xf32>
    %3 = tpu.matmul %2, %1, %cst {dimension_numbers = #tpu.dot_dimension_numbers<[1], [0], [0], [1], [0, 0, 1, 1], [], []>} : vector<320x144xf32>, vector<144x784xf32>, vector<320x784xf32> -> vector<320x784xf32>
    %c0_4 = arith.constant 0 : index
    %c0_5 = arith.constant 0 : index
    %c0_6 = arith.constant 0 : index
    %4 = vector.load %arg3[%c0_4, %c0_5, %c0_6] : memref<1x320x784xf32, #tpu.memory_space<vmem>>, vector<1x320x784xf32>
    %5 = vector.shape_cast %4 : vector<1x320x784xf32> to vector<320x784xf32>
    %6 = vector.shape_cast %3 : vector<320x784xf32> to vector<1x320x784xf32>
    tpu.vector_store %arg3[%c0_4, %c0_5, %c0_6], %6 {strides = array<i32>} : memref<1x320x784xf32, #tpu.memory_space<vmem>>, vector<1x320x784xf32>,
    return
  }
  func.func @transform_0(%arg0: i32) -> (i32, i32, i32) {
    %c0_i32 = arith.constant 0 : i32
    %c0_i32_0 = arith.constant 0 : i32
    %c0_i32_1 = arith.constant 0 : i32
    return %arg0, %c0_i32, %c0_i32_0 : i32, i32, i32
  }
  func.func @transform_1(%arg0: i32) -> (i32, i32) {
    %c0_i32 = arith.constant 0 : i32
    %c0_i32_0 = arith.constant 0 : i32
    %c0_i32_1 = arith.constant 0 : i32
    return %c0_i32, %c0_i32_0 : i32, i32
  }
  func.func @transform_2(%arg0: i32) -> (i32, i32, i32) {
    %c0_i32 = arith.constant 0 : i32
    %c0_i32_0 = arith.constant 0 : i32
    %c0_i32_1 = arith.constant 0 : i32
    return %arg0, %c0_i32, %c0_i32_0 : i32, i32, i32
  }
}

</mosaic_0001>

<bundles_post_ra>
// kernel: tpu_custom_call.1
= control target key start
LH: loop header
LB: loop body
LE: loop exit
PB: predicated region body
PF: predicated region fallthrough
CT: control target
= control target key end

     0   :  { %7 = vsyncpa [#allocation3], 0  ;;  %s3157_s0 = inlined_call_operand.hbm [shape: f32[1,144,784], index: 0, kind: input, shape index: {}]   ;;  %s3158_s1 = inlined_call_operand.vmem [shape: f32[320,144], index: 1, kind: input, shape index: {}]   ;;  %s3159_s2 = inlined_call_operand.hbm [shape: f32[1,320,784], index: 2, kind: output, shape index: {}]  }
   0x1   :  { %8 = vsyncpa [#allocation4], 0  ;;  %s2178_s9 = smov [#allocation2]   ;;  %s2130_s13 = scalar_lea.hbm %s3157_s0, 16128 }
   0x2   :  { %s14_s10 = sshll.u32 %s2178_s9, 4  ;;  %p2131_p0 = scmp.ne.s32.totalorder %s3157_s0, %s2130_s13  ;;  %s15_s10 = int_to_ptr.vmem [resolvable:$true] %s14_s10 }
   0x3   :  { %p2134_p1 = scmp.lt.u32.totalorder %s2130_s13, %s3157_s0 }
   0x5   :  { %p2136_p2 = pnand %p2134_p1, %p2131_p0 }
   0x7   :  { %2139 = shalt.err (!%p2136_p2)
}
   0x8   :  { %s2140_s18 = scalar_lea.vmem %s15_s10, 16128  ;;  %p2145_p4 = scmp.lt.s32.totalorder %s15_s10, %s15_s10 }
   0x9   :  { %p2141_p3 = scmp.ne.s32.totalorder %s15_s10, %s2140_s18  ;;  %p2146_p5 = scmp.lt.s32.totalorder %s2140_s18, %s2140_s18 }
   0xb   :  { %p2147_p6 = por %p2146_p5, %p2145_p4 }
   0xd   :  { %p2148_p7 = pnand %p2147_p6, %p2141_p3 }
   0xf   :  { %2151 = shalt.err (!%p2148_p7)
}
  0x10   :  { %s2179_s19 = smov 896   ;;  %s2180_s20 = smov 56  }
  0x11   :  { %20 = dma.hbm_to_vmem [thread:$0]  %s3157_s0, 16128, %s15_s10, [#allocation3], %s2179_s19, %s2179_s19, %s2180_s20  }
  0x12   :  { %2174 = dma.done.wait [#allocation3], 16128  }
  0x13   :  { %2175 = vsyncadd [#allocation3], 4294951168  ;;  %v27_v0 = vld [vmem:[#allocation2 + $0x8] sm:$0xff]  ;;  %v34_v1 = vld [vmem:[#allocation2 + $0x40] sm:$0xff]  ;;  %vm232_vm0 = vcmask 130048  }
  0x14   :  { %v26_v2 = vld [vmem:[#allocation2] sm:$0xff]  ;;  %v1990_v3 = vpack.c.bf16 %v34_v1, %v27_v0  ;;  %v33_v4 = vld [vmem:[#allocation2 + $0x38] sm:$0xff]  ;;  %v36_v6 = vld [vmem:[#allocation2 + $0x50] sm:$0xff] }
  0x15   :  { %v29_v5 = vld [vmem:[#allocation2 + $0x18] sm:$0xff]  ;;  %v1992_v7 = vpack.c.bf16 %v33_v4, %v26_v2  ;;  %v28_v9 = vld [vmem:[#allocation2 + $0x10] sm:$0xff]  ;;  %v35_v10 = vld [vmem:[#allocation2 + $0x48] sm:$0xff] }
  0x16   :  { %v2026_v8 = vpack.c.bf16 %v36_v6, %v29_v5  ;;  %v41_v11 = vld [vmem:[#allocation2 + $0x78] sm:$0xff]  ;;  %1991 = vmatprep.subr.bf16.mxu0 %v1990_v3  ;;  %v2028_v12 = vpack.c.bf16 %v35_v10, %v28_v9  ;;  %v48_v13 = vld [vmem:[#allocation2 + $0xb0] sm:$0xff]  ;;  %v47_v15 = vld [vmem:[#allocation2 + $0xa8] sm:$0xff] }
  0x17   :  { %v40_v14 = vld [vmem:[#allocation2 + $0x70] sm:$0xff]  ;;  %1993 = vmatpush1.bf16.msra.mxu0 %v1992_v7  ;;  %v1994_v16 = vpack.c.bf16 %v48_v13, %v41_v11  ;;  %v43_v18 = vld [vmem:[#allocation2 + $0x88] sm:$0xff]  ;;  %v50_v19 = vld [vmem:[#allocation2 + $0xc0] sm:$0xff] }
  0x18   :  { %2027 = vmatprep.subr.bf16.mxu1 %v2026_v8  ;;  %v1996_v17 = vpack.c.bf16 %v47_v15, %v40_v14  ;;  %v42_v20 = vld [vmem:[#allocation2 + $0x80] sm:$0xff]  ;;  %v2030_v21 = vpack.c.bf16 %v50_v19, %v43_v18  ;;  %v49_v22 = vld [vmem:[#allocation2 + $0xb8] sm:$0xff]  ;;  %v55_v23 = vld [vmem:[#allocation2 + $0xe8] sm:$0xff] }
  0x19   :  { %2029 = vmatpush1.bf16.msra.mxu1 %v2028_v12  ;;  %v62_v24 = vld [vmem:[#allocation2 + $0x120] sm:$0xff]  ;;  %1995 = vmatprep.subr.bf16.mxu0 %v1994_v16  ;;  %v2032_v25 = vpack.c.bf16 %v49_v22, %v42_v20  ;;  %v61_v28 = vld [vmem:[#allocation2 + $0x118] sm:$0xff]  ;;  %v64_v30 = vld [vmem:[#allocation2 + $0x130] sm:$0xff] }
  0x1a   :  { %v1998_v26 = vpack.c.bf16 %v62_v24, %v55_v23  ;;  %v54_v27 = vld [vmem:[#allocation2 + $0xe0] sm:$0xff]  ;;  %v57_v29 = vld [vmem:[#allocation2 + $0xf8] sm:$0xff]  ;;  %2031 = vmatprep.subr.bf16.mxu1 %v2030_v21  ;;  %v56_v31 = vld [vmem:[#allocation2 + $0xf0] sm:$0xff] }
  0x1b   :  { %v63_v32 = vld [vmem:[#allocation2 + $0x128] sm:$0xff]  ;;  %1997 = vmatpush1.bf16.msra.mxu0 %v1996_v17  ;;  %v2000_v33 = vpack.c.bf16 %v61_v28, %v54_v27  ;;  %v2034_v34 = vpack.c.bf16 %v64_v30, %v57_v29  ;;  %v69_v35 = vld [vmem:[#allocation2 + $0x158] sm:$0xff]  ;;  %v76_v36 = vld [vmem:[#allocation2 + $0x190] sm:$0xff] }
  0x1c   :  { %v68_v37 = vld [vmem:[#allocation2 + $0x150] sm:$0xff]  ;;  %1999 = vmatprep.subr.bf16.mxu0 %v1998_v26  ;;  %v2036_v38 = vpack.c.bf16 %v63_v32, %v56_v31  ;;  %v2002_v39 = vpack.c.bf16 %v76_v36, %v69_v35  ;;  %v75_v40 = vld [vmem:[#allocation2 + $0x188] sm:$0xff]  ;;  %v78_v42 = vld [vmem:[#allocation2 + $0x1a0] sm:$0xff] }
  0x1d   :  { %2033 = vmatpush1.bf16.msra.mxu1 %v2032_v25  ;;  %v71_v41 = vld [vmem:[#allocation2 + $0x168] sm:$0xff]  ;;  %v70_v44 = vld [vmem:[#allocation2 + $0x160] sm:$0xff]  ;;  %v77_v45 = vld [vmem:[#allocation2 + $0x198] sm:$0xff]  ;;  %v2004_v48 = vpack.c.bf16 %v75_v40, %v68_v37 }
  0x1e   :  { %2035 = vmatprep.subr.bf16.mxu1 %v2034_v34  ;;  %v2038_v43 = vpack.c.bf16 %v78_v42, %v71_v41  ;;  %v83_v46 = vld [vmem:[#allocation2 + $0x1c8] sm:$0xff]  ;;  %v90_v47 = vld [vmem:[#allocation2 + $0x200] sm:$0xff]  ;;  %v85_v49 = vld [vmem:[#allocation2 + $0x1d8] sm:$0xff]  ;;  %v2040_v51 = vpack.c.bf16 %v77_v45, %v70_v44 }
  0x1f   :  { %2001 = vmatpush1.bf16.msra.mxu0 %v2000_v33  ;;  %v92_v50 = vld [vmem:[#allocation2 + $0x210] sm:$0xff]  ;;  %v2006_v52 = vpack.c.bf16 %v90_v47, %v83_v46  ;;  %v82_v53 = vld [vmem:[#allocation2 + $0x1c0] sm:$0xff]  ;;  %v89_v54 = vld [vmem:[#allocation2 + $0x1f8] sm:$0xff] }
  0x20   :  { %2003 = vmatprep.subr.bf16.mxu0 %v2002_v39  ;;  %v84_v55 = vld [vmem:[#allocation2 + $0x1d0] sm:$0xff]  ;;  %v2042_v56 = vpack.c.bf16 %v92_v50, %v85_v49  ;;  %v91_v57 = vld [vmem:[#allocation2 + $0x208] sm:$0xff]  ;;  %v97_v58 = vld [vmem:[#allocation2 + $0x238] sm:$0xff]  ;;  %v2008_v62 = vpack.c.bf16 %v89_v54, %v82_v53 }
  0x21   :  { %2037 = vmatpush1.bf16.msra.mxu1 %v2036_v38  ;;  %v104_v59 = vld [vmem:[#allocation2 + $0x270] sm:$0xff]  ;;  %v99_v60 = vld [vmem:[#allocation2 + $0x248] sm:$0xff]  ;;  %v106_v61 = vld [vmem:[#allocation2 + $0x280] sm:$0xff]  ;;  %v2044_v63 = vpack.c.bf16 %v91_v57, %v84_v55 }
  0x22   :  { %2039 = vmatprep.subr.bf16.mxu1 %v2038_v43  ;;  %v2010_v0 = vpack.c.bf16 %v104_v59, %v97_v58  ;;  %v96_v1 = vld [vmem:[#allocation2 + $0x230] sm:$0xff]  ;;  %v103_v2 = vld [vmem:[#allocation2 + $0x268] sm:$0xff]  ;;  %v98_v3 = vld [vmem:[#allocation2 + $0x240] sm:$0xff]  ;;  %v2046_v4 = vpack.c.bf16 %v106_v61, %v99_v60  ;;  %v2181_v58 = vmov 0.0|0.0  }
  0x23   :  { %2005 = vmatpush1.bf16.msra.mxu0 %v2004_v48  ;;  %v105_v5 = vld [vmem:[#allocation2 + $0x278] sm:$0xff]  ;;  %v111_v6 = vld [vmem:[#allocation2 + $0x2a8] sm:$0xff]  ;;  %v118_v7 = vld [vmem:[#allocation2 + $0x2e0] sm:$0xff]  ;;  %v2012_v10 = vpack.c.bf16 %v103_v2, %v96_v1 }
  0x24   :  { %2007 = vmatprep.subr.bf16.mxu0 %v2006_v52  ;;  %v113_v8 = vld [vmem:[#allocation2 + $0x2b8] sm:$0xff]  ;;  %v120_v9 = vld [vmem:[#allocation2 + $0x2f0] sm:$0xff]  ;;  %v2048_v11 = vpack.c.bf16 %v105_v5, %v98_v3  ;;  %v2014_v12 = vpack.c.bf16 %v118_v7, %v111_v6  ;;  %v110_v13 = vld [vmem:[#allocation2 + $0x2a0] sm:$0xff] }
  0x25   :  { %2041 = vmatpush1.bf16.msra.mxu1 %v2040_v51  ;;  %v117_v14 = vld [vmem:[#allocation2 + $0x2d8] sm:$0xff]  ;;  %v112_v15 = vld [vmem:[#allocation2 + $0x2b0] sm:$0xff]  ;;  %v2050_v16 = vpack.c.bf16 %v120_v9, %v113_v8  ;;  %v119_v17 = vld [vmem:[#allocation2 + $0x2e8] sm:$0xff] }
  0x26   :  { %2043 = vmatprep.subr.bf16.mxu1 %v2042_v56  ;;  %v125_v18 = vld [vmem:[#allocation2 + $0x318] sm:$0xff]  ;;  %v132_v19 = vld [vmem:[#allocation2 + $0x350] sm:$0xff]  ;;  %v127_v20 = vld [vmem:[#allocation2 + $0x328] sm:$0xff]  ;;  %v2016_v22 = vpack.c.bf16 %v117_v14, %v110_v13  ;;  %v2052_v24 = vpack.c.bf16 %v119_v17, %v112_v15 }
  0x27   :  { %2009 = vmatpush1.bf16.msra.mxu0 %v2008_v62  ;;  %v134_v21 = vld [vmem:[#allocation2 + $0x360] sm:$0xff]  ;;  %v2216_v23 = vld [vmem:[%s3158_s1 + $0x8] sm:$0xff]  ;;  %v2018_v25 = vpack.c.bf16 %v132_v19, %v125_v18  ;;  %v124_v26 = vld [vmem:[#allocation2 + $0x310] sm:$0xff] }
  0x28   :  { %2011 = vmatprep.subr.bf16.mxu0 %v2010_v0  ;;  %v131_v27 = vld [vmem:[#allocation2 + $0x348] sm:$0xff]  ;;  %v126_v28 = vld [vmem:[#allocation2 + $0x320] sm:$0xff]  ;;  %v2054_v29 = vpack.c.bf16 %v134_v21, %v127_v20  ;;  %v133_v30 = vld [vmem:[#allocation2 + $0x358] sm:$0xff]  ;;  %1830 = vmatprep.mubr.msk.f32.mxu0 %vm232_vm0, %v2216_v23 }
  0x29   :  { %2045 = vmatpush1.bf16.msra.mxu1 %v2044_v63  ;;  %v139_v31 = vld [vmem:[#allocation2 + $0x388] sm:$0xff]  ;;  %v146_v32 = vld [vmem:[#allocation2 + $0x3c0] sm:$0xff]  ;;  %v141_v33 = vld [vmem:[#allocation2 + $0x398] sm:$0xff]  ;;  %1870 = vmatprep.mubr.msk.f32.mxu1 %vm232_vm0, %v2216_v23  ;;  %v2020_v35 = vpack.c.bf16 %v131_v27, %v124_v26  ;;  %v2056_v36 = vpack.c.bf16 %v133_v30, %v126_v28 }
  0x2a   :  { %2047 = vmatprep.subr.bf16.mxu1 %v2046_v4  ;;  %v148_v34 = vld [vmem:[#allocation2 + $0x3d0] sm:$0xff]  ;;  %v2022_v37 = vpack.c.bf16 %v146_v32, %v139_v31  ;;  %v138_v38 = vld [vmem:[#allocation2 + $0x380] sm:$0xff]  ;;  %v145_v39 = vld [vmem:[#allocation2 + $0x3b8] sm:$0xff] }
  0x2b   :  { %2013 = vmatpush1.bf16.msra.mxu0 %v2012_v10  ;;  %v140_v40 = vld [vmem:[#allocation2 + $0x390] sm:$0xff]  ;;  %v2058_v41 = vpack.c.bf16 %v148_v34, %v141_v33  ;;  %v147_v42 = vld [vmem:[#allocation2 + $0x3c8] sm:$0xff]  ;;  %v38_v44 = vld [vmem:[#allocation2 + $0x60] sm:$0xff]  ;;  %v2024_v45 = vpack.c.bf16 %v145_v39, %v138_v38 }
  0x2c   :  { %2015 = vmatprep.subr.bf16.mxu0 %v2014_v12  ;;  %v31_v43 = vld [vmem:[#allocation2 + $0x28] sm:$0xff]  ;;  %v2060_v46 = vpack.c.bf16 %v147_v42, %v140_v40  ;;  %v30_v48 = vld [vmem:[#allocation2 + $0x20] sm:$0xff]  ;;  %v37_v49 = vld [vmem:[#allocation2 + $0x58] sm:$0xff] }
  0x2d   :  { %2049 = vmatpush1.bf16.msra.mxu1 %v2048_v11  ;;  %v2062_v47 = vpack.c.bf16 %v38_v44, %v31_v43  ;;  %v32_v50 = vld [vmem:[#allocation2 + $0x30] sm:$0xff]  ;;  %v39_v51 = vld [vmem:[#allocation2 + $0x68] sm:$0xff]  ;;  %v45_v52 = vld [vmem:[#allocation2 + $0x98] sm:$0xff]  ;;  %v2064_v55 = vpack.c.bf16 %v37_v49, %v30_v48 }
  0x2e   :  { %2051 = vmatprep.subr.bf16.mxu1 %v2050_v16  ;;  %v52_v53 = vld [vmem:[#allocation2 + $0xd0] sm:$0xff]  ;;  %v2225_v54 = vld [vmem:[%s3158_s1] sm:$0xff]  ;;  %v2099_v56 = vpack.c.bf16 %v39_v51, %v32_v50  ;;  %v2230_v57 = vld [vmem:[%s3158_s1 + $0x18] sm:$0xff] }
  0x2f   :  { %2017 = vmatpush1.bf16.msra.mxu0 %v2016_v22  ;;  %v2066_v59 = vpack.c.bf16 %v52_v53, %v45_v52  ;;  %v44_v60 = vld [vmem:[#allocation2 + $0x90] sm:$0xff]  ;;  %v51_v61 = vld [vmem:[#allocation2 + $0xc8] sm:$0xff]  ;;  %v46_v62 = vld [vmem:[#allocation2 + $0xa0] sm:$0xff] }
  0x30   :  { %2019 = vmatprep.subr.bf16.mxu0 %v2018_v25  ;;  %v53_v63 = vld [vmem:[#allocation2 + $0xd8] sm:$0xff]  ;;  %v59_v0 = vld [vmem:[#allocation2 + $0x108] sm:$0xff]  ;;  %v66_v1 = vld [vmem:[#allocation2 + $0x140] sm:$0xff]  ;;  %v2068_v4 = vpack.c.bf16 %v51_v61, %v44_v60 }
  0x31   :  { %2053 = vmatpush1.bf16.msra.mxu1 %v2052_v24  ;;  %v2238_v2 = vld [vmem:[%s3158_s1 + $0x10] sm:$0xff]  ;;  %v2245_v3 = vld [vmem:[%s3158_s1 + $0x28] sm:$0xff]  ;;  %v2102_v5 = vpack.c.bf16 %v53_v63, %v46_v62  ;;  %v2070_v6 = vpack.c.bf16 %v66_v1, %v59_v0  ;;  %v58_v7 = vld [vmem:[#allocation2 + $0x100] sm:$0xff] }
  0x32   :  { %2055 = vmatprep.subr.bf16.mxu1 %v2054_v29  ;;  %v65_v8 = vld [vmem:[#allocation2 + $0x138] sm:$0xff]  ;;  %v60_v9 = vld [vmem:[#allocation2 + $0x110] sm:$0xff]  ;;  %v67_v10 = vld [vmem:[#allocation2 + $0x148] sm:$0xff] }
  0x33   :  { %2021 = vmatpush1.bf16.msra.mxu0 %v2020_v35  ;;  %v73_v11 = vld [vmem:[#allocation2 + $0x178] sm:$0xff]  ;;  %v80_v12 = vld [vmem:[#allocation2 + $0x1b0] sm:$0xff]  ;;  %v2257_v13 = vld [vmem:[%s3158_s1 + $0x20] sm:$0xff]  ;;  %v2072_v15 = vpack.c.bf16 %v65_v8, %v58_v7  ;;  %v2105_v16 = vpack.c.bf16 %v67_v10, %v60_v9 }
  0x34   :  { %2023 = vmatprep.subr.bf16.mxu0 %v2022_v37  ;;  %v2264_v14 = vld [vmem:[%s3158_s1 + $0x38] sm:$0xff]  ;;  %v2074_v17 = vpack.c.bf16 %v80_v12, %v73_v11  ;;  %v72_v18 = vld [vmem:[#allocation2 + $0x170] sm:$0xff]  ;;  %v79_v19 = vld [vmem:[#allocation2 + $0x1a8] sm:$0xff] }
  0x35   :  { %2057 = vmatpush1.bf16.msra.mxu1 %v2056_v36  ;;  %v74_v20 = vld [vmem:[#allocation2 + $0x180] sm:$0xff]  ;;  %v81_v21 = vld [vmem:[#allocation2 + $0x1b8] sm:$0xff]  ;;  %v87_v22 = vld [vmem:[#allocation2 + $0x1e8] sm:$0xff]  ;;  %v2076_v27 = vpack.c.bf16 %v79_v19, %v72_v18 }
  0x36   :  { %2059 = vmatprep.subr.bf16.mxu1 %v2058_v41  ;;  %v94_v24 = vld [vmem:[#allocation2 + $0x220] sm:$0xff]  ;;  %v2274_v25 = vld [vmem:[%s3158_s1 + $0x30] sm:$0xff]  ;;  %v2281_v26 = vld [vmem:[%s3158_s1 + $0x48] sm:$0xff]  ;;  %v2108_v28 = vpack.c.bf16 %v81_v21, %v74_v20 }
  0x37   :  { %2025 = vmatpush1.bf16.msra.mxu0 %v2024_v45  ;;  %v2078_v29 = vpack.c.bf16 %v94_v24, %v87_v22  ;;  %v86_v30 = vld [vmem:[#allocation2 + $0x1e0] sm:$0xff]  ;;  %v93_v31 = vld [vmem:[#allocation2 + $0x218] sm:$0xff]  ;;  %v88_v32 = vld [vmem:[#allocation2 + $0x1f0] sm:$0xff] }
  0x38   :  { %2063 = vmatprep.subr.bf16.mxu0 %v2062_v47  ;;  %v95_v33 = vld [vmem:[#allocation2 + $0x228] sm:$0xff]  ;;  %v101_v34 = vld [vmem:[#allocation2 + $0x258] sm:$0xff]  ;;  %v108_v35 = vld [vmem:[#allocation2 + $0x290] sm:$0xff]  ;;  %v2080_v38 = vpack.c.bf16 %v93_v31, %v86_v30 }
  0x39   :  { %2061 = vmatpush1.bf16.msra.mxu1 %v2060_v46  ;;  %v2291_v36 = vld [vmem:[%s3158_s1 + $0x40] sm:$0xff]  ;;  %v2298_v37 = vld [vmem:[%s3158_s1 + $0x58] sm:$0xff]  ;;  %v2111_v39 = vpack.c.bf16 %v95_v33, %v88_v32  ;;  %v2082_v40 = vpack.c.bf16 %v108_v35, %v101_v34  ;;  %v100_v41 = vld [vmem:[#allocation2 + $0x250] sm:$0xff] }
  0x3a   :  { %2098 = vmatprep.subr.bf16.mxu1 %v2181_v58  ;;  %418 = vmatmul.mubr.f32.vlgmr.msra.gmra.mrb[0].mxu0 %v2225_v54  ;;  %v107_v42 = vld [vmem:[#allocation2 + $0x288] sm:$0xff]  ;;  %v102_v43 = vld [vmem:[#allocation2 + $0x260] sm:$0xff]  ;;  %v109_v44 = vld [vmem:[#allocation2 + $0x298] sm:$0xff] }
  0x3b   :  { %2065 = vmatpush1.bf16.msra.mxu0 %v2064_v55  ;;  %1831 = vmatprep.mubr.msk.f32.mxu0 %vm232_vm0, %v2230_v57  ;;  %v115_v45 = vld [vmem:[#allocation2 + $0x2c8] sm:$0xff]  ;;  %v122_v46 = vld [vmem:[#allocation2 + $0x300] sm:$0xff]  ;;  %v2308_v47 = vld [vmem:[%s3158_s1 + $0x50] sm:$0xff]  ;;  %v2084_v49 = vpack.c.bf16 %v107_v42, %v100_v41  ;;  %v2114_v50 = vpack.c.bf16 %v109_v44, %v102_v43 }
  0x3c   :  { %723 = vmatmul.mubr.f32.vlgmr.msra.gmra.mrb[0].mxu1 %v2225_v54  ;;  %2067 = vmatprep.subr.bf16.mxu0 %v2066_v59  ;;  %v2315_v48 = vld [vmem:[%s3158_s1 + $0x68] sm:$0xff]  ;;  %v2086_v51 = vpack.c.bf16 %v122_v46, %v115_v45  ;;  %v114_v52 = vld [vmem:[#allocation2 + $0x2c0] sm:$0xff]  ;;  %v121_v53 = vld [vmem:[#allocation2 + $0x2f8] sm:$0xff] }
  0x3d   :  { %2100 = vmatpush1.bf16.msra.mxu1 %v2099_v56  ;;  %1871 = vmatprep.mubr.msk.f32.mxu1 %vm232_vm0, %v2230_v57  ;;  %v116_v55 = vld [vmem:[#allocation2 + $0x2d0] sm:$0xff]  ;;  %v123_v56 = vld [vmem:[#allocation2 + $0x308] sm:$0xff]  ;;  %v129_v59 = vld [vmem:[#allocation2 + $0x338] sm:$0xff]  ;;  %v2088_v63 = vpack.c.bf16 %v121_v53, %v114_v52 }
  0x3e   :  { %424 = vmatmul.mubr.f32.gmra.mrb[2].mxu0 %v2238_v2  ;;  %2101 = vmatprep.subr.bf16.mxu1 %v2181_v58  ;;  %v136_v60 = vld [vmem:[#allocation2 + $0x370] sm:$0xff]  ;;  %v2325_v61 = vld [vmem:[%s3158_s1 + $0x60] sm:$0xff]  ;;  %v2332_v62 = vld [vmem:[%s3158_s1 + $0x78] sm:$0xff]  ;;  %v2117_v0 = vpack.c.bf16 %v123_v56, %v116_v55 }
  0x3f   :  { %1832 = vmatprep.mubr.msk.f32.mxu0 %vm232_vm0, %v2245_v3  ;;  %2069 = vmatpush1.bf16.msra.mxu0 %v2068_v4  ;;  %v2090_v1 = vpack.c.bf16 %v136_v60, %v129_v59  ;;  %v128_v4 = vld [vmem:[#allocation2 + $0x330] sm:$0xff]  ;;  %v137_v7 = vld [vmem:[#allocation2 + $0x378] sm:$0xff]  ;;  %v143_v9 = vld [vmem:[#allocation2 + $0x3a8] sm:$0xff] }
  0x40   :  { %729 = vmatmul.mubr.f32.gmra.mrb[2].mxu1 %v2238_v2  ;;  %2071 = vmatprep.subr.bf16.mxu0 %v2070_v6  ;;  %v130_v6 = vld [vmem:[#allocation2 + $0x340] sm:$0xff]  ;;  %v2342_v8 = vld [vmem:[%s3158_s1 + $0x70] sm:$0xff]  ;;  %v2349_v11 = vld [vmem:[%s3158_s1 + $0x88] sm:$0xff] }
  0x41   :  { %1872 = vmatprep.mubr.msk.f32.mxu1 %vm232_vm0, %v2245_v3  ;;  %2103 = vmatpush1.bf16.msra.mxu1 %v2102_v5  ;;  %v135_v5 = vld [vmem:[#allocation2 + $0x368] sm:$0xff]  ;;  %v150_v10 = vld [vmem:[#allocation2 + $0x3e0] sm:$0xff]  ;;  %v149_v18 = vld [vmem:[#allocation2 + $0x3d8] sm:$0xff] }
  0x42   :  { %430 = vmatmul.mubr.f32.gmra.mrb[4].mxu0 %v2257_v13  ;;  %2104 = vmatprep.subr.bf16.mxu1 %v2181_v58  ;;  %v2092_v12 = vpack.c.bf16 %v135_v5, %v128_v4  ;;  %v144_v19 = vld [vmem:[#allocation2 + $0x3b0] sm:$0xff]  ;;  %v151_v20 = vld [vmem:[#allocation2 + $0x3e8] sm:$0xff]  ;;  %v2359_v21 = vld [vmem:[%s3158_s1 + $0x80] sm:$0xff] }
  0x43   :  { %1833 = vmatprep.mubr.msk.f32.mxu0 %vm232_vm0, %v2264_v14  ;;  %2073 = vmatpush1.bf16.msra.mxu0 %v2072_v15  ;;  %v2120_v15 = vpack.c.bf16 %v137_v7, %v130_v6  ;;  %v2366_v22 = vld [vmem:[%s3158_s1 + $0x98] sm:$0xff]  ;;  %v2408_v31 = vld [vmem:[%s3158_s1 + $0xb0] sm:$0xff]  ;;  %v2415_v32 = vld [vmem:[%s3158_s1 + $0xc8] sm:$0xff] }
  0x44   :  { %735 = vmatmul.mubr.f32.gmra.mrb[4].mxu1 %v2257_v13  ;;  %2075 = vmatprep.subr.bf16.mxu0 %v2074_v17  ;;  %v142_v17 = vld [vmem:[#allocation2 + $0x3a0] sm:$0xff]  ;;  %v2399_v30 = vld [vmem:[%s3158_s1 + $0xb8] sm:$0xff]  ;;  %v2440_v35 = vld [vmem:[%s3158_s1 + $0xd0] sm:$0xff] }
  0x45   :  { %1873 = vmatprep.mubr.msk.f32.mxu1 %vm232_vm0, %v2264_v14  ;;  %2106 = vmatpush1.bf16.msra.mxu1 %v2105_v16  ;;  %v2094_v16 = vpack.c.bf16 %v150_v10, %v143_v9  ;;  %v2096_v24 = vpack.c.bf16 %v149_v18, %v142_v17  ;;  %v2424_v33 = vld [vmem:[%s3158_s1 + $0xc0] sm:$0xff]  ;;  %v2431_v34 = vld [vmem:[%s3158_s1 + $0xd8] sm:$0xff]  ;;  %v2472_v41 = vld [vmem:[%s3158_s1 + $0xf0] sm:$0xff] }
  0x46   :  { %436 = vmatmul.mubr.f32.gmra.mrb[6].mxu0 %v2274_v25  ;;  %2107 = vmatprep.subr.bf16.mxu1 %v2181_v58  ;;  %v2479_v42 = vld [vmem:[%s3158_s1 + $0x108] sm:$0xff]  ;;  %v2488_v43 = vld [vmem:[%s3158_s1 + $0x100] sm:$0xff]  ;;  %v2495_v44 = vld [vmem:[%s3158_s1 + $0x118] sm:$0xff] }
  0x47   :  { %1834 = vmatprep.mubr.msk.f32.mxu0 %vm232_vm0, %v2281_v26  ;;  %2077 = vmatpush1.bf16.msra.mxu0 %v2076_v27  ;;  %v2123_v27 = vpack.c.bf16 %v151_v20, %v144_v19  ;;  %v2504_v45 = vld [vmem:[%s3158_s1 + $0x110] sm:$0xff]  ;;  %v2511_v46 = vld [vmem:[%s3158_s1 + $0x128] sm:$0xff]  ;;  %v2552_v53 = vld [vmem:[%s3158_s1 + $0x140] sm:$0xff] }
  0x48   :  { %741 = vmatmul.mubr.f32.gmra.mrb[6].mxu1 %v2274_v25  ;;  %2079 = vmatprep.subr.bf16.mxu0 %v2078_v29  ;;  %v2383_v29 = vld [vmem:[%s3158_s1 + $0xa8] sm:$0xff]  ;;  %v2559_v55 = vld [vmem:[%s3158_s1 + $0x158] sm:$0xff]  ;;  %v2568_v56 = vld [vmem:[%s3158_s1 + $0x150] sm:$0xff] }
  0x49   :  { %1874 = vmatprep.mubr.msk.f32.mxu1 %vm232_vm0, %v2281_v26  ;;  %2109 = vmatpush1.bf16.msra.mxu1 %v2108_v28  ;;  %v2376_v28 = vld [vmem:[%s3158_s1 + $0x90] sm:$0xff]  ;;  %v2543_v52 = vld [vmem:[%s3158_s1 + $0x148] sm:$0xff]  ;;  %v2584_v60 = vld [vmem:[%s3158_s1 + $0x160] sm:$0xff] }
  0x4a   :  { %442 = vmatmul.mubr.f32.gmra.mrb[8].mxu0 %v2291_v36  ;;  %2110 = vmatprep.subr.bf16.mxu1 %v2181_v58  ;;  %v2575_v59 = vld [vmem:[%s3158_s1 + $0x168] sm:$0xff]  ;;  %v2616_v4 = vld [vmem:[%s3158_s1 + $0x180] sm:$0xff]  ;;  %v2623_v5 = vld [vmem:[%s3158_s1 + $0x198] sm:$0xff] }
  0x4b   :  { %1835 = vmatprep.mubr.msk.f32.mxu0 %vm232_vm0, %v2298_v37  ;;  %2081 = vmatpush1.bf16.msra.mxu0 %v2080_v38  ;;  %v2447_v38 = vld [vmem:[%s3158_s1 + $0xe8] sm:$0xff]  ;;  %v2632_v6 = vld [vmem:[%s3158_s1 + $0x190] sm:$0xff]  ;;  %v2648_v9 = vld [vmem:[%s3158_s1 + $0x1a0] sm:$0xff] }
  0x4c   :  { %747 = vmatmul.mubr.f32.gmra.mrb[8].mxu1 %v2291_v36  ;;  %2083 = vmatprep.subr.bf16.mxu0 %v2082_v40  ;;  %v2463_v40 = vld [vmem:[%s3158_s1 + $0xf8] sm:$0xff]  ;;  %v2639_v7 = vld [vmem:[%s3158_s1 + $0x1a8] sm:$0xff]  ;;  %v2696_v18 = vld [vmem:[%s3158_s1 + $0x1d0] sm:$0xff] }
  0x4d   :  { %1875 = vmatprep.mubr.msk.f32.mxu1 %vm232_vm0, %v2298_v37  ;;  %2112 = vmatpush1.bf16.msra.mxu1 %v2111_v39  ;;  %v2456_v39 = vld [vmem:[%s3158_s1 + $0xe0] sm:$0xff]  ;;  %v2655_v10 = vld [vmem:[%s3158_s1 + $0x1b8] sm:$0xff]  ;;  %v2703_v19 = vld [vmem:[%s3158_s1 + $0x1e8] sm:$0xff] }
  0x4e   :  { %448 = vmatmul.mubr.f32.gmra.mrb[10].mxu0 %v2308_v47  ;;  %2113 = vmatprep.subr.bf16.mxu1 %v2181_v58  ;;  %v2687_v17 = vld [vmem:[%s3158_s1 + $0x1d8] sm:$0xff]  ;;  %3192 = vst [vmem:[#allocation8_spill] sm:$0xff] %v2703_v19  ;;  %v2712_v20 = vld [vmem:[%s3158_s1 + $0x1e0] sm:$0xff] }
  0x4f   :  { %1836 = vmatprep.mubr.msk.f32.mxu0 %vm232_vm0, %v2315_v48  ;;  %2085 = vmatpush1.bf16.msra.mxu0 %v2084_v49  ;;  %v2520_v49 = vld [vmem:[%s3158_s1 + $0x120] sm:$0xff]  ;;  %3193 = vst [vmem:[#allocation9_spill] sm:$0xff] %v2712_v20 }
  0x50   :  { %753 = vmatmul.mubr.f32.gmra.mrb[10].mxu1 %v2308_v47  ;;  %2087 = vmatprep.subr.bf16.mxu0 %v2086_v51  ;;  %v2536_v51 = vld [vmem:[%s3158_s1 + $0x130] sm:$0xff] }
  0x51   :  { %1876 = vmatprep.mubr.msk.f32.mxu1 %vm232_vm0, %v2315_v48  ;;  %2115 = vmatpush1.bf16.msra.mxu1 %v2114_v50  ;;  %v2527_v50 = vld [vmem:[%s3158_s1 + $0x138] sm:$0xff] }
  0x52   :  { %454 = vmatmul.mubr.f32.gmra.mrb[12].mxu0 %v2325_v61  ;;  %2116 = vmatprep.subr.bf16.mxu1 %v2181_v58 }
  0x53   :  { %1837 = vmatprep.mubr.msk.f32.mxu0 %vm232_vm0, %v2332_v62  ;;  %2089 = vmatpush1.bf16.msra.mxu0 %v2088_v63  ;;  %v2591_v63 = vld [vmem:[%s3158_s1 + $0x178] sm:$0xff] }
  0x54   :  { %759 = vmatmul.mubr.f32.gmra.mrb[12].mxu1 %v2325_v61  ;;  %2091 = vmatprep.subr.bf16.mxu0 %v2090_v1  ;;  %v2607_v1 = vld [vmem:[%s3158_s1 + $0x188] sm:$0xff] }
  0x55   :  { %1877 = vmatprep.mubr.msk.f32.mxu1 %vm232_vm0, %v2332_v62  ;;  %2118 = vmatpush1.bf16.msra.mxu1 %v2117_v0  ;;  %v2600_v0 = vld [vmem:[%s3158_s1 + $0x170] sm:$0xff] }
  0x56   :  { %460 = vmatmul.mubr.f32.gmra.mrb[14].mxu0 %v2342_v8  ;;  %2119 = vmatprep.subr.bf16.mxu1 %v2181_v58 }
  0x57   :  { %1838 = vmatprep.mubr.msk.f32.mxu0 %vm232_vm0, %v2349_v11  ;;  %2093 = vmatpush1.bf16.msra.mxu0 %v2092_v12  ;;  %v2664_v12 = vld [vmem:[%s3158_s1 + $0x1b0] sm:$0xff] }
  0x58   :  { %765 = vmatmul.mubr.f32.gmra.mrb[14].mxu1 %v2342_v8  ;;  %2095 = vmatprep.subr.bf16.mxu0 %v2094_v16  ;;  %v2680_v16 = vld [vmem:[%s3158_s1 + $0x1c0] sm:$0xff] }
  0x59   :  { %1878 = vmatprep.mubr.msk.f32.mxu1 %vm232_vm0, %v2349_v11  ;;  %2121 = vmatpush1.bf16.msra.mxu1 %v2120_v15  ;;  %v2671_v15 = vld [vmem:[%s3158_s1 + $0x1c8] sm:$0xff] }
  0x5a   :  { %466 = vmatmul.mubr.f32.gmra.mrb[16].mxu0 %v2359_v21  ;;  %2122 = vmatprep.subr.bf16.mxu1 %v2181_v58  ;;  %v2392_v58 = vld [vmem:[%s3158_s1 + $0xa0] sm:$0xff] }
  0x5b   :  { %1839 = vmatprep.mubr.msk.f32.mxu0 %vm232_vm0, %v2366_v22  ;;  %2097 = vmatpush1.bf16.msra.mxu0 %v2096_v24  ;;  %v2719_v24 = vld [vmem:[%s3158_s1 + $0x1f8] sm:$0xff] }
  0x5c   :  { %771 = vmatmul.mubr.f32.gmra.mrb[16].mxu1 %v2359_v21  ;;  %3194 = vst [vmem:[#allocation10_spill] sm:$0xff] %v2719_v24 }
  0x5d   :  { %1879 = vmatprep.mubr.msk.f32.mxu1 %vm232_vm0, %v2366_v22  ;;  %2124 = vmatpush1.bf16.msra.mxu1 %v2123_v27  ;;  %v2728_v27 = vld [vmem:[%s3158_s1 + $0x1f0] sm:$0xff] }
  0x5e   :  { %472 = vmatmul.mubr.f32.gmra.mrb[18].mxu0 %v2376_v28  ;;  %3195 = vst [vmem:[#allocation11_spill] sm:$0xff] %v2728_v27 }
  0x5f   :  { %1840 = vmatprep.mubr.msk.f32.mxu0 %vm232_vm0, %v2383_v29 }
  0x60   :  { %777 = vmatmul.mubr.f32.gmra.mrb[18].mxu1 %v2376_v28 }
  0x61   :  { %1880 = vmatprep.mubr.msk.f32.mxu1 %vm232_vm0, %v2383_v29 }
  0x62   :  { %478 = vmatmul.mubr.f32.gmra.mrb[20].mxu0 %v2392_v58 }
  0x63   :  { %1841 = vmatprep.mubr.msk.f32.mxu0 %vm232_vm0, %v2399_v30 }
  0x64   :  { %783 = vmatmul.mubr.f32.gmra.mrb[20].mxu1 %v2392_v58 }
  0x65   :  { %1881 = vmatprep.mubr.msk.f32.mxu1 %vm232_vm0, %v2399_v30 }
  0x66   :  { %484 = vmatmul.mubr.f32.gmra.mrb[22].mxu0 %v2408_v31 }
  0x67   :  { %1842 = vmatprep.mubr.msk.f32.mxu0 %vm232_vm0, %v2415_v32 }
  0x68   :  { %789 = vmatmul.mubr.f32.gmra.mrb[22].mxu1 %v2408_v31 }
  0x69   :  { %1882 = vmatprep.mubr.msk.f32.mxu1 %vm232_vm0, %v2415_v32 }
  0x6a   :  { %490 = vmatmul.mubr.f32.gmra.mrb[24].mxu0 %v2424_v33 }
  0x6b   :  { %1843 = vmatprep.mubr.msk.f32.mxu0 %vm232_vm0, %v2431_v34 }
  0x6c   :  { %795 = vmatmul.mubr.f32.gmra.mrb[24].mxu1 %v2424_v33 }
  0x6d   :  { %1883 = vmatprep.mubr.msk.f32.mxu1 %vm232_vm0, %v2431_v34 }
  0x6e   :  { %496 = vmatmul.mubr.f32.gmra.mrb[26].mxu0 %v2440_v35 }
  0x6f   :  { %1844 = vmatprep.mubr.msk.f32.mxu0 %vm232_vm0, %v2447_v38 }
  0x70   :  { %801 = vmatmul.mubr.f32.gmra.mrb[26].mxu1 %v2440_v35 }
  0x71   :  { %1884 = vmatprep.mubr.msk.f32.mxu1 %vm232_vm0, %v2447_v38 }
  0x72   :  { %502 = vmatmul.mubr.f32.gmra.mrb[28].mxu0 %v2456_v39 }
  0x73   :  { %1845 = vmatprep.mubr.msk.f32.mxu0 %vm232_vm0, %v2463_v40 }
  0x74   :  { %807 = vmatmul.mubr.f32.gmra.mrb[28].mxu1 %v2456_v39 }
  0x75   :  { %1885 = vmatprep.mubr.msk.f32.mxu1 %vm232_vm0, %v2463_v40 }
  0x76   :  { %508 = vmatmul.mubr.f32.gmra.mrb[30].mxu0 %v2472_v41 }
  0x77   :  { %1846 = vmatprep.mubr.msk.f32.mxu0 %vm232_vm0, %v2479_v42 }
  0x78   :  { %813 = vmatmul.mubr.f32.gmra.mrb[30].mxu1 %v2472_v41 }
  0x79   :  { %1886 = vmatprep.mubr.msk.f32.mxu1 %vm232_vm0, %v2479_v42 }
  0x7a   :  { %514 = vmatmul.mubr.f32.gmra.mrb[32].mxu0 %v2488_v43 }
  0x7b   :  { %1847 = vmatprep.mubr.msk.f32.mxu0 %vm232_vm0, %v2495_v44 }
  0x7c   :  { %819 = vmatmul.mubr.f32.gmra.mrb[32].mxu1 %v2488_v43 }
  0x7d   :  { %1887 = vmatprep.mubr.msk.f32.mxu1 %vm232_vm0, %v2495_v44 }
  0x7e   :  { %520 = vmatmul.mubr.f32.gmra.mrb[34].mxu0 %v2504_v45 }
  0x7f   :  { %1848 = vmatprep.mubr.msk.f32.mxu0 %vm232_vm0, %v2511_v46 }
  0x80   :  { %825 = vmatmul.mubr.f32.gmra.mrb[34].mxu1 %v2504_v45 }
  0x81   :  { %1888 = vmatprep.mubr.msk.f32.mxu1 %vm232_vm0, %v2511_v46 }
  0x82   :  { %526 = vmatmul.mubr.f32.gmra.mrb[36].mxu0 %v2520_v49 }
  0x83   :  { %1849 = vmatprep.mubr.msk.f32.mxu0 %vm232_vm0, %v2527_v50 }
  0x84   :  { %831 = vmatmul.mubr.f32.gmra.mrb[36].mxu1 %v2520_v49 }
  0x85   :  { %1889 = vmatprep.mubr.msk.f32.mxu1 %vm232_vm0, %v2527_v50 }
  0x86   :  { %532 = vmatmul.mubr.f32.gmra.mrb[38].mxu0 %v2536_v51 }
  0x87   :  { %1850 = vmatprep.mubr.msk.f32.mxu0 %vm232_vm0, %v2543_v52 }
  0x88   :  { %837 = vmatmul.mubr.f32.gmra.mrb[38].mxu1 %v2536_v51 }
  0x89   :  { %1890 = vmatprep.mubr.msk.f32.mxu1 %vm232_vm0, %v2543_v52 }
  0x8a   :  { %538 = vmatmul.mubr.f32.gmra.mrb[40].mxu0 %v2552_v53 }
  0x8b   :  { %1851 = vmatprep.mubr.msk.f32.mxu0 %vm232_vm0, %v2559_v55 }
  0x8c   :  { %843 = vmatmul.mubr.f32.gmra.mrb[40].mxu1 %v2552_v53 }
  0x8d   :  { %1891 = vmatprep.mubr.msk.f32.mxu1 %vm232_vm0, %v2559_v55 }
  0x8e   :  { %544 = vmatmul.mubr.f32.gmra.mrb[42].mxu0 %v2568_v56 }
  0x8f   :  { %1852 = vmatprep.mubr.msk.f32.mxu0 %vm232_vm0, %v2575_v59 }
  0x90   :  { %849 = vmatmul.mubr.f32.gmra.mrb[42].mxu1 %v2568_v56 }
  0x91   :  { %1892 = vmatprep.mubr.msk.f32.mxu1 %vm232_vm0, %v2575_v59 }
  0x92   :  { %550 = vmatmul.mubr.f32.gmra.mrb[44].mxu0 %v2584_v60 }
  0x93   :  { %1853 = vmatprep.mubr.msk.f32.mxu0 %vm232_vm0, %v2591_v63 }
  0x94   :  { %855 = vmatmul.mubr.f32.gmra.mrb[44].mxu1 %v2584_v60 }
  0x95   :  { %1893 = vmatprep.mubr.msk.f32.mxu1 %vm232_vm0, %v2591_v63 }
  0x96   :  { %556 = vmatmul.mubr.f32.gmra.mrb[46].mxu0 %v2600_v0 }
  0x97   :  { %1854 = vmatprep.mubr.msk.f32.mxu0 %vm232_vm0, %v2607_v1 }
  0x98   :  { %861 = vmatmul.mubr.f32.gmra.mrb[46].mxu1 %v2600_v0 }
  0x99   :  { %1894 = vmatprep.mubr.msk.f32.mxu1 %vm232_vm0, %v2607_v1 }
  0x9a   :  { %562 = vmatmul.mubr.f32.gmra.mrb[48].mxu0 %v2616_v4 }
  0x9b   :  { %1855 = vmatprep.mubr.msk.f32.mxu0 %vm232_vm0, %v2623_v5 }
  0x9c   :  { %867 = vmatmul.mubr.f32.gmra.mrb[48].mxu1 %v2616_v4 }
  0x9d   :  { %1895 = vmatprep.mubr.msk.f32.mxu1 %vm232_vm0, %v2623_v5 }
  0x9e   :  { %568 = vmatmul.mubr.f32.gmra.mrb[50].mxu0 %v2632_v6 }
  0x9f   :  { %1856 = vmatprep.mubr.msk.f32.mxu0 %vm232_vm0, %v2639_v7 }
  0xa0   :  { %873 = vmatmul.mubr.f32.gmra.mrb[50].mxu1 %v2632_v6 }
  0xa1   :  { %1896 = vmatprep.mubr.msk.f32.mxu1 %vm232_vm0, %v2639_v7 }
  0xa2   :  { %574 = vmatmul.mubr.f32.gmra.mrb[52].mxu0 %v2648_v9 }
  0xa3   :  { %1857 = vmatprep.mubr.msk.f32.mxu0 %vm232_vm0, %v2655_v10 }
  0xa4   :  { %879 = vmatmul.mubr.f32.gmra.mrb[52].mxu1 %v2648_v9 }
  0xa5   :  { %1897 = vmatprep.mubr.msk.f32.mxu1 %vm232_vm0, %v2655_v10 }
  0xa6   :  { %580 = vmatmul.mubr.f32.gmra.mrb[54].mxu0 %v2664_v12 }
  0xa7   :  { %1858 = vmatprep.mubr.msk.f32.mxu0 %vm232_vm0, %v2671_v15 }
  0xa8   :  { %885 = vmatmul.mubr.f32.gmra.mrb[54].mxu1 %v2664_v12 }
  0xa9   :  { %1898 = vmatprep.mubr.msk.f32.mxu1 %vm232_vm0, %v2671_v15 }
  0xaa   :  { %586 = vmatmul.mubr.f32.gmra.mrb[56].mxu0 %v2680_v16 }
  0xab   :  { %1859 = vmatprep.mubr.msk.f32.mxu0 %vm232_vm0, %v2687_v17 }
  0xac   :  { %891 = vmatmul.mubr.f32.gmra.mrb[56].mxu1 %v2680_v16 }
  0xad   :  { %1899 = vmatprep.mubr.msk.f32.mxu1 %vm232_vm0, %v2687_v17 }
  0xae   :  { %592 = vmatmul.mubr.f32.gmra.mrb[58].mxu0 %v2696_v18 }
  0xaf   :  { %1860 = vmatprep.mubr.msk.f32.mxu0 %vm232_vm0, %v2703_v19 }
  0xb0   :  { %897 = vmatmul.mubr.f32.gmra.mrb[58].mxu1 %v2696_v18 }
  0xb1   :  { %1900 = vmatprep.mubr.msk.f32.mxu1 %vm232_vm0, %v2703_v19  ;;  %v2735_v19 = vld [vmem:[%s3158_s1 + $0x208] sm:$0xff] }
  0xb2   :  { %598 = vmatmul.mubr.f32.gmra.mrb[60].mxu0 %v2712_v20  ;;  %3196 = vst [vmem:[#allocation12_spill] sm:$0xff] %v2735_v19 }
  0xb3   :  { %1861 = vmatprep.mubr.msk.f32.mxu0 %vm232_vm0, %v2719_v24 }
  0xb4   :  { %903 = vmatmul.mubr.f32.gmra.mrb[60].mxu1 %v2712_v20  ;;  %v2744_v20 = vld [vmem:[%s3158_s1 + $0x200] sm:$0xff] }
  0xb5   :  { %1901 = vmatprep.mubr.msk.f32.mxu1 %vm232_vm0, %v2719_v24  ;;  %3197 = vst [vmem:[#allocation13_spill] sm:$0xff] %v2744_v20  ;;  %v2751_v24 = vld [vmem:[%s3158_s1 + $0x218] sm:$0xff] }
  0xb6   :  { %604 = vmatmul.mubr.f32.gmra.mrb[62].mxu0 %v2728_v27  ;;  %3198 = vst [vmem:[#allocation14_spill] sm:$0xff] %v2751_v24 }
  0xb7   :  { %1862 = vmatprep.mubr.msk.f32.mxu0 %vm232_vm0, %v2735_v19 }
  0xb8   :  { %909 = vmatmul.mubr.f32.gmra.mrb[62].mxu1 %v2728_v27  ;;  %v2760_v27 = vld [vmem:[%s3158_s1 + $0x210] sm:$0xff] }
  0xb9   :  { %1902 = vmatprep.mubr.msk.f32.mxu1 %vm232_vm0, %v2735_v19  ;;  %3199 = vst [vmem:[#allocation15_spill] sm:$0xff] %v2760_v27  ;;  %v2767_v19 = vld [vmem:[%s3158_s1 + $0x228] sm:$0xff] }
  0xba   :  { %610 = vmatmul.mubr.f32.gmra.mrb[64].mxu0 %v2744_v20  ;;  %3200 = vst [vmem:[#allocation16_spill] sm:$0xff] %v2767_v19 }
  0xbb   :  { %1863 = vmatprep.mubr.msk.f32.mxu0 %vm232_vm0, %v2751_v24 }
  0xbc   :  { %915 = vmatmul.mubr.f32.gmra.mrb[64].mxu1 %v2744_v20  ;;  %v2776_v20 = vld [vmem:[%s3158_s1 + $0x220] sm:$0xff] }
  0xbd   :  { %1903 = vmatprep.mubr.msk.f32.mxu1 %vm232_vm0, %v2751_v24  ;;  %3201 = vst [vmem:[#allocation17_spill] sm:$0xff] %v2776_v20  ;;  %v2783_v24 = vld [vmem:[%s3158_s1 + $0x238] sm:$0xff] }
  0xbe   :  { %616 = vmatmul.mubr.f32.gmra.mrb[66].mxu0 %v2760_v27  ;;  %3202 = vst [vmem:[#allocation18_spill] sm:$0xff] %v2783_v24 }
  0xbf   :  { %1864 = vmatprep.mubr.msk.f32.mxu0 %vm232_vm0, %v2767_v19 }
  0xc0   :  { %921 = vmatmul.mubr.f32.gmra.mrb[66].mxu1 %v2760_v27  ;;  %v2792_v27 = vld [vmem:[%s3158_s1 + $0x230] sm:$0xff] }
  0xc1   :  { %1904 = vmatprep.mubr.msk.f32.mxu1 %vm232_vm0, %v2767_v19  ;;  %3203 = vst [vmem:[#allocation19_spill] sm:$0xff] %v2792_v27  ;;  %v2799_v19 = vld [vmem:[%s3158_s1 + $0x248] sm:$0xff] }
  0xc2   :  { %622 = vmatmul.mubr.f32.gmra.mrb[68].mxu0 %v2776_v20  ;;  %3204 = vst [vmem:[#allocation20_spill] sm:$0xff] %v2799_v19 }
  0xc3   :  { %1865 = vmatprep.mubr.msk.f32.mxu0 %vm232_vm0, %v2783_v24 }
  0xc4   :  { %927 = vmatmul.mubr.f32.gmra.mrb[68].mxu1 %v2776_v20  ;;  %v2808_v20 = vld [vmem:[%s3158_s1 + $0x240] sm:$0xff] }
  0xc5   :  { %1905 = vmatprep.mubr.msk.f32.mxu1 %vm232_vm0, %v2783_v24  ;;  %3205 = vst [vmem:[#allocation21_spill] sm:$0xff] %v2808_v20  ;;  %v2815_v24 = vld [vmem:[%s3158_s1 + $0x258] sm:$0xff] }
  0xc6   :  { %628 = vmatmul.mubr.f32.gmra.mrb[70].mxu0 %v2792_v27  ;;  %3206 = vst [vmem:[#allocation22_spill] sm:$0xff] %v2815_v24 }
  0xc7   :  { %1866 = vmatprep.mubr.msk.f32.mxu0 %vm232_vm0, %v2799_v19 }
  0xc8   :  { %933 = vmatmul.mubr.f32.gmra.mrb[70].mxu1 %v2792_v27  ;;  %v2824_v27 = vld [vmem:[%s3158_s1 + $0x250] sm:$0xff] }
  0xc9   :  { %1906 = vmatprep.mubr.msk.f32.mxu1 %vm232_vm0, %v2799_v19  ;;  %3207 = vst [vmem:[#allocation23_spill] sm:$0xff] %v2824_v27  ;;  %v2831_v19 = vld [vmem:[%s3158_s1 + $0x268] sm:$0xff] }
  0xca   :  { %634 = vmatmul.mubr.f32.gmra.mrb[72].mxu0 %v2808_v20 }
  0xcb   :  { %1867 = vmatprep.mubr.msk.f32.mxu0 %vm232_vm0, %v2815_v24 }
  0xcc   :  { %939 = vmatmul.mubr.f32.gmra.mrb[72].mxu1 %v2808_v20  ;;  %v2840_v20 = vld [vmem:[%s3158_s1 + $0x260] sm:$0xff] }
  0xcd   :  { %1907 = vmatprep.mubr.msk.f32.mxu1 %vm232_vm0, %v2815_v24  ;;  %v2847_v24 = vld [vmem:[%s3158_s1 + $0x278] sm:$0xff] }
  0xce   :  { %640 = vmatmul.mubr.f32.gmra.mrb[74].mxu0 %v2824_v27 }
  0xcf   :  { %1868 = vmatprep.mubr.msk.f32.mxu0 %vm232_vm0, %v2831_v19 }
  0xd0   :  { %945 = vmatmul.mubr.f32.gmra.mrb[74].mxu1 %v2824_v27  ;;  %v2856_v27 = vld [vmem:[%s3158_s1 + $0x270] sm:$0xff]  ;;  %s2182_s1 = smov [#allocation5]  }
  0xd1   :  { %1908 = vmatprep.mubr.msk.f32.mxu1 %vm232_vm0, %v2831_v19  ;;  %s1818_s21 = sshll.u32 %s2182_s1, 4  ;;  %s1819_s21 = int_to_ptr.vmem [resolvable:$true] %s1818_s21 }
  0xd2   :  { %646 = vmatmul.mubr.f32.gmra.mrb[76].mxu0 %v2840_v20  ;;  %s2152_s22 = scalar_lea.vmem %s1819_s21, 35840  ;;  %p2157_p9 = scmp.lt.s32.totalorder %s1819_s21, %s1819_s21 }
  0xd3   :  { %1869 = vmatprep.mubr.msk.f32.mxu0 %vm232_vm0, %v2847_v24  ;;  %p2153_p8 = scmp.ne.s32.totalorder %s1819_s21, %s2152_s22  ;;  %p2158_p10 = scmp.lt.s32.totalorder %s2152_s22, %s2152_s22 }
  0xd4   :  { %951 = vmatmul.mubr.f32.gmra.mrb[76].mxu1 %v2840_v20 }
  0xd5   :  { %1909 = vmatprep.mubr.msk.f32.mxu1 %vm232_vm0, %v2847_v24  ;;  %p2159_p11 = por %p2158_p10, %p2157_p9 }
  0xd6   :  { %652 = vmatmul.mubr.f32.gmra.mrb[78].mxu0 %v2856_v27 }
  0xd7   :  { %1910 = vmatprep.mubr.msk.f32.mxu0 %vm232_vm0, %v2216_v23  ;;  %p2160_p12 = pnand %p2159_p11, %p2153_p8 }
  0xd8   :  { %957 = vmatmul.mubr.f32.gmra.mrb[78].mxu1 %v2856_v27 }
  0xd9   :  { %1950 = vmatprep.mubr.msk.f32.mxu1 %vm232_vm0, %v2216_v23 }
  0xda   :  { %1028 = vmatmul.mubr.f32.vlgmr.msra.gmra.mrb[80].mxu0 %v2225_v54 }
  0xdb   :  { %1911 = vmatprep.mubr.msk.f32.mxu0 %vm232_vm0, %v2230_v57 }
  0xdc   :  { %1333 = vmatmul.mubr.f32.vlgmr.msra.gmra.mrb[80].mxu1 %v2225_v54 }
  0xdd   :  { %1951 = vmatprep.mubr.msk.f32.mxu1 %vm232_vm0, %v2230_v57 }
  0xde   :  { %1034 = vmatmul.mubr.f32.gmra.mrb[82].mxu0 %v2238_v2 }
  0xdf   :  { %1912 = vmatprep.mubr.msk.f32.mxu0 %vm232_vm0, %v2245_v3 }
  0xe0   :  { %1338 = vmatmul.mubr.f32.gmra.mrb[82].mxu1 %v2238_v2 }
  0xe1   :  { %1952 = vmatprep.mubr.msk.f32.mxu1 %vm232_vm0, %v2245_v3 }
  0xe2   :  { %1040 = vmatmul.mubr.f32.gmra.mrb[84].mxu0 %v2257_v13 }
  0xe3   :  { %1913 = vmatprep.mubr.msk.f32.mxu0 %vm232_vm0, %v2264_v14 }
  0xe4   :  { %1343 = vmatmul.mubr.f32.gmra.mrb[84].mxu1 %v2257_v13 }
  0xe5   :  { %1953 = vmatprep.mubr.msk.f32.mxu1 %vm232_vm0, %v2264_v14 }
  0xe6   :  { %1046 = vmatmul.mubr.f32.gmra.mrb[86].mxu0 %v2274_v25 }
  0xe7   :  { %1914 = vmatprep.mubr.msk.f32.mxu0 %vm232_vm0, %v2281_v26 }
  0xe8   :  { %1348 = vmatmul.mubr.f32.gmra.mrb[86].mxu1 %v2274_v25 }
  0xe9   :  { %1954 = vmatprep.mubr.msk.f32.mxu1 %vm232_vm0, %v2281_v26 }
  0xea   :  { %1052 = vmatmul.mubr.f32.gmra.mrb[88].mxu0 %v2291_v36 }
  0xeb   :  { %1915 = vmatprep.mubr.msk.f32.mxu0 %vm232_vm0, %v2298_v37 }
  0xec   :  { %1353 = vmatmul.mubr.f32.gmra.mrb[88].mxu1 %v2291_v36 }
  0xed   :  { %1955 = vmatprep.mubr.msk.f32.mxu1 %vm232_vm0, %v2298_v37 }
  0xee   :  { %1058 = vmatmul.mubr.f32.gmra.mrb[90].mxu0 %v2308_v47 }
  0xef   :  { %1916 = vmatprep.mubr.msk.f32.mxu0 %vm232_vm0, %v2315_v48 }
  0xf0   :  { %1358 = vmatmul.mubr.f32.gmra.mrb[90].mxu1 %v2308_v47 }
  0xf1   :  { %1956 = vmatprep.mubr.msk.f32.mxu1 %vm232_vm0, %v2315_v48 }
  0xf2   :  { %1064 = vmatmul.mubr.f32.gmra.mrb[92].mxu0 %v2325_v61 }
  0xf3   :  { %1917 = vmatprep.mubr.msk.f32.mxu0 %vm232_vm0, %v2332_v62 }
  0xf4   :  { %1363 = vmatmul.mubr.f32.gmra.mrb[92].mxu1 %v2325_v61 }
  0xf5   :  { %1957 = vmatprep.mubr.msk.f32.mxu1 %vm232_vm0, %v2332_v62 }
  0xf6   :  { %1070 = vmatmul.mubr.f32.gmra.mrb[94].mxu0 %v2342_v8 }
  0xf7   :  { %1918 = vmatprep.mubr.msk.f32.mxu0 %vm232_vm0, %v2349_v11 }
  0xf8   :  { %1368 = vmatmul.mubr.f32.gmra.mrb[94].mxu1 %v2342_v8 }
  0xf9   :  { %1958 = vmatprep.mubr.msk.f32.mxu1 %vm232_vm0, %v2349_v11 }
  0xfa   :  { %1076 = vmatmul.mubr.f32.gmra.mrb[96].mxu0 %v2359_v21 }
  0xfb   :  { %1919 = vmatprep.mubr.msk.f32.mxu0 %vm232_vm0, %v2366_v22 }
  0xfc   :  { %1373 = vmatmul.mubr.f32.gmra.mrb[96].mxu1 %v2359_v21 }
  0xfd   :  { %1959 = vmatprep.mubr.msk.f32.mxu1 %vm232_vm0, %v2366_v22 }
  0xfe   :  { %1082 = vmatmul.mubr.f32.gmra.mrb[98].mxu0 %v2376_v28 }
  0xff   :  { %1920 = vmatprep.mubr.msk.f32.mxu0 %vm232_vm0, %v2383_v29 }
 0x100   :  { %1378 = vmatmul.mubr.f32.gmra.mrb[98].mxu1 %v2376_v28 }
 0x101   :  { %1960 = vmatprep.mubr.msk.f32.mxu1 %vm232_vm0, %v2383_v29 }
 0x102   :  { %1088 = vmatmul.mubr.f32.gmra.mrb[100].mxu0 %v2392_v58 }
 0x103   :  { %1921 = vmatprep.mubr.msk.f32.mxu0 %vm232_vm0, %v2399_v30 }
 0x104   :  { %1383 = vmatmul.mubr.f32.gmra.mrb[100].mxu1 %v2392_v58 }
 0x105   :  { %1961 = vmatprep.mubr.msk.f32.mxu1 %vm232_vm0, %v2399_v30 }
 0x106   :  { %1094 = vmatmul.mubr.f32.gmra.mrb[102].mxu0 %v2408_v31 }
 0x107   :  { %1922 = vmatprep.mubr.msk.f32.mxu0 %vm232_vm0, %v2415_v32 }
 0x108   :  { %1388 = vmatmul.mubr.f32.gmra.mrb[102].mxu1 %v2408_v31 }
 0x109   :  { %1962 = vmatprep.mubr.msk.f32.mxu1 %vm232_vm0, %v2415_v32 }
 0x10a   :  { %1100 = vmatmul.mubr.f32.gmra.mrb[104].mxu0 %v2424_v33 }
 0x10b   :  { %1923 = vmatprep.mubr.msk.f32.mxu0 %vm232_vm0, %v2431_v34 }
 0x10c   :  { %1393 = vmatmul.mubr.f32.gmra.mrb[104].mxu1 %v2424_v33 }
 0x10d   :  { %1963 = vmatprep.mubr.msk.f32.mxu1 %vm232_vm0, %v2431_v34  ;;  %v419_v23 = vpop.f32.mrb[0].mxu0 }
 0x10e   :  { %1533 = vst [vmem:[#allocation5] sm:$0xff] %v419_v23  ;;  %v421_v54 = vpop.f32.mrb[1].mxu0  ;;  %1106 = vmatmul.mubr.f32.gmra.mrb[106].mxu0 %v2440_v35 }
 0x10f   :  { %v724_v57 = vpop.f32.mrb[0].mxu1  ;;  %1534 = vst [vmem:[#allocation5 + $0x8] sm:$0xff] %v421_v54  ;;  %1924 = vmatprep.mubr.msk.f32.mxu0 %vm232_vm0, %v2447_v38 }
 0x110   :  { %1535 = vst [vmem:[#allocation5 + $0x10] sm:$0xff] %v724_v57  ;;  %v726_v2 = vpop.f32.mrb[1].mxu1  ;;  %1398 = vmatmul.mubr.f32.gmra.mrb[106].mxu1 %v2440_v35 }
 0x111   :  { %1536 = vst [vmem:[#allocation5 + $0x18] sm:$0xff] %v726_v2  ;;  %1964 = vmatprep.mubr.msk.f32.mxu1 %vm232_vm0, %v2447_v38  ;;  %v425_v3 = vpop.f32.mrb[2].mxu0 }
 0x112   :  { %1540 = vst [vmem:[#allocation5 + $0x38] sm:$0xff] %v425_v3  ;;  %v427_v13 = vpop.f32.mrb[3].mxu0  ;;  %1112 = vmatmul.mubr.f32.gmra.mrb[108].mxu0 %v2456_v39 }
 0x113   :  { %v730_v14 = vpop.f32.mrb[2].mxu1  ;;  %1541 = vst [vmem:[#allocation5 + $0x40] sm:$0xff] %v427_v13  ;;  %1925 = vmatprep.mubr.msk.f32.mxu0 %vm232_vm0, %v2463_v40 }
 0x114   :  { %1542 = vst [vmem:[#allocation5 + $0x48] sm:$0xff] %v730_v14  ;;  %v732_v25 = vpop.f32.mrb[3].mxu1  ;;  %1403 = vmatmul.mubr.f32.gmra.mrb[108].mxu1 %v2456_v39 }
 0x115   :  { %1543 = vst [vmem:[#allocation5 + $0x50] sm:$0xff] %v732_v25  ;;  %1965 = vmatprep.mubr.msk.f32.mxu1 %vm232_vm0, %v2463_v40  ;;  %v431_v26 = vpop.f32.mrb[4].mxu0 }
 0x116   :  { %1547 = vst [vmem:[#allocation5 + $0x70] sm:$0xff] %v431_v26  ;;  %v433_v36 = vpop.f32.mrb[5].mxu0  ;;  %1118 = vmatmul.mubr.f32.gmra.mrb[110].mxu0 %v2472_v41 }
 0x117   :  { %v736_v37 = vpop.f32.mrb[4].mxu1  ;;  %1548 = vst [vmem:[#allocation5 + $0x78] sm:$0xff] %v433_v36  ;;  %1926 = vmatprep.mubr.msk.f32.mxu0 %vm232_vm0, %v2479_v42 }
 0x118   :  { %1549 = vst [vmem:[#allocation5 + $0x80] sm:$0xff] %v736_v37  ;;  %v738_v47 = vpop.f32.mrb[5].mxu1  ;;  %1408 = vmatmul.mubr.f32.gmra.mrb[110].mxu1 %v2472_v41 }
 0x119   :  { %1550 = vst [vmem:[#allocation5 + $0x88] sm:$0xff] %v738_v47  ;;  %1966 = vmatprep.mubr.msk.f32.mxu1 %vm232_vm0, %v2479_v42  ;;  %v437_v48 = vpop.f32.mrb[6].mxu0  ;;  %v3208_v47 = vld [vmem:[#allocation8_spill] sm:$0xff] }
 0x11a   :  { %1554 = vst [vmem:[#allocation5 + $0xa8] sm:$0xff] %v437_v48  ;;  %v439_v61 = vpop.f32.mrb[7].mxu0  ;;  %1124 = vmatmul.mubr.f32.gmra.mrb[112].mxu0 %v2488_v43 }
 0x11b   :  { %v742_v62 = vpop.f32.mrb[6].mxu1  ;;  %1555 = vst [vmem:[#allocation5 + $0xb0] sm:$0xff] %v439_v61  ;;  %1927 = vmatprep.mubr.msk.f32.mxu0 %vm232_vm0, %v2495_v44  ;;  %v3209_v61 = vld [vmem:[#allocation9_spill] sm:$0xff] }
 0x11c   :  { %1556 = vst [vmem:[#allocation5 + $0xb8] sm:$0xff] %v742_v62  ;;  %v744_v8 = vpop.f32.mrb[7].mxu1  ;;  %1413 = vmatmul.mubr.f32.gmra.mrb[112].mxu1 %v2488_v43 }
 0x11d   :  { %1557 = vst [vmem:[#allocation5 + $0xc0] sm:$0xff] %v744_v8  ;;  %1967 = vmatprep.mubr.msk.f32.mxu1 %vm232_vm0, %v2495_v44  ;;  %v443_v11 = vpop.f32.mrb[8].mxu0  ;;  %v3210_v8 = vld [vmem:[#allocation10_spill] sm:$0xff] }
 0x11e   :  { %1561 = vst [vmem:[#allocation5 + $0xe0] sm:$0xff] %v443_v11  ;;  %v445_v21 = vpop.f32.mrb[9].mxu0  ;;  %1130 = vmatmul.mubr.f32.gmra.mrb[114].mxu0 %v2504_v45 }
 0x11f   :  { %v748_v22 = vpop.f32.mrb[8].mxu1  ;;  %1562 = vst [vmem:[#allocation5 + $0xe8] sm:$0xff] %v445_v21  ;;  %1928 = vmatprep.mubr.msk.f32.mxu0 %vm232_vm0, %v2511_v46 }
 0x120   :  { %1563 = vst [vmem:[#allocation5 + $0xf0] sm:$0xff] %v748_v22  ;;  %v750_v28 = vpop.f32.mrb[9].mxu1  ;;  %1418 = vmatmul.mubr.f32.gmra.mrb[114].mxu1 %v2504_v45  ;;  %v3211_v22 = vld [vmem:[#allocation11_spill] sm:$0xff] }
 0x121   :  { %1564 = vst [vmem:[#allocation5 + $0xf8] sm:$0xff] %v750_v28  ;;  %1968 = vmatprep.mubr.msk.f32.mxu1 %vm232_vm0, %v2511_v46  ;;  %v449_v29 = vpop.f32.mrb[10].mxu0 }
 0x122   :  { %1568 = vst [vmem:[#allocation5 + $0x118] sm:$0xff] %v449_v29  ;;  %v451_v58 = vpop.f32.mrb[11].mxu0  ;;  %1136 = vmatmul.mubr.f32.gmra.mrb[116].mxu0 %v2520_v49  ;;  %v3212_v29 = vld [vmem:[#allocation12_spill] sm:$0xff] }
 0x123   :  { %v754_v30 = vpop.f32.mrb[10].mxu1  ;;  %1569 = vst [vmem:[#allocation5 + $0x120] sm:$0xff] %v451_v58  ;;  %1929 = vmatprep.mubr.msk.f32.mxu0 %vm232_vm0, %v2527_v50 }
 0x124   :  { %1570 = vst [vmem:[#allocation5 + $0x128] sm:$0xff] %v754_v30  ;;  %v756_v31 = vpop.f32.mrb[11].mxu1  ;;  %1423 = vmatmul.mubr.f32.gmra.mrb[116].mxu1 %v2520_v49 }
 0x125   :  { %1571 = vst [vmem:[#allocation5 + $0x130] sm:$0xff] %v756_v31  ;;  %1969 = vmatprep.mubr.msk.f32.mxu1 %vm232_vm0, %v2527_v50  ;;  %v455_v32 = vpop.f32.mrb[12].mxu0 }
 0x126   :  { %1575 = vst [vmem:[#allocation5 + $0x150] sm:$0xff] %v455_v32  ;;  %v457_v33 = vpop.f32.mrb[13].mxu0  ;;  %1142 = vmatmul.mubr.f32.gmra.mrb[118].mxu0 %v2536_v51  ;;  %v3213_v32 = vld [vmem:[#allocation13_spill] sm:$0xff] }
 0x127   :  { %v760_v34 = vpop.f32.mrb[12].mxu1  ;;  %1576 = vst [vmem:[#allocation5 + $0x158] sm:$0xff] %v457_v33  ;;  %1930 = vmatprep.mubr.msk.f32.mxu0 %vm232_vm0, %v2543_v52 }
 0x128   :  { %1577 = vst [vmem:[#allocation5 + $0x160] sm:$0xff] %v760_v34  ;;  %v762_v35 = vpop.f32.mrb[13].mxu1  ;;  %1428 = vmatmul.mubr.f32.gmra.mrb[118].mxu1 %v2536_v51  ;;  %v3214_v34 = vld [vmem:[#allocation14_spill] sm:$0xff] }
 0x129   :  { %1578 = vst [vmem:[#allocation5 + $0x168] sm:$0xff] %v762_v35  ;;  %1970 = vmatprep.mubr.msk.f32.mxu1 %vm232_vm0, %v2543_v52  ;;  %v461_v38 = vpop.f32.mrb[14].mxu0 }
 0x12a   :  { %1582 = vst [vmem:[#allocation5 + $0x188] sm:$0xff] %v461_v38  ;;  %v463_v39 = vpop.f32.mrb[15].mxu0  ;;  %1148 = vmatmul.mubr.f32.gmra.mrb[120].mxu0 %v2552_v53 }
 0x12b   :  { %v766_v40 = vpop.f32.mrb[14].mxu1  ;;  %1583 = vst [vmem:[#allocation5 + $0x190] sm:$0xff] %v463_v39  ;;  %1931 = vmatprep.mubr.msk.f32.mxu0 %vm232_vm0, %v2559_v55 }
 0x12c   :  { %1584 = vst [vmem:[#allocation5 + $0x198] sm:$0xff] %v766_v40  ;;  %v768_v41 = vpop.f32.mrb[15].mxu1  ;;  %1433 = vmatmul.mubr.f32.gmra.mrb[120].mxu1 %v2552_v53  ;;  %v3215_v40 = vld [vmem:[#allocation15_spill] sm:$0xff] }
 0x12d   :  { %1585 = vst [vmem:[#allocation5 + $0x1a0] sm:$0xff] %v768_v41  ;;  %1971 = vmatprep.mubr.msk.f32.mxu1 %vm232_vm0, %v2559_v55  ;;  %v467_v42 = vpop.f32.mrb[16].mxu0 }
 0x12e   :  { %1589 = vst [vmem:[#allocation5 + $0x1c0] sm:$0xff] %v467_v42  ;;  %v469_v43 = vpop.f32.mrb[17].mxu0  ;;  %1154 = vmatmul.mubr.f32.gmra.mrb[122].mxu0 %v2568_v56  ;;  %v3216_v42 = vld [vmem:[#allocation16_spill] sm:$0xff] }
 0x12f   :  { %v772_v44 = vpop.f32.mrb[16].mxu1  ;;  %1590 = vst [vmem:[#allocation5 + $0x1c8] sm:$0xff] %v469_v43  ;;  %1932 = vmatprep.mubr.msk.f32.mxu0 %vm232_vm0, %v2575_v59 }
 0x130   :  { %1591 = vst [vmem:[#allocation5 + $0x1d0] sm:$0xff] %v772_v44  ;;  %v774_v45 = vpop.f32.mrb[17].mxu1  ;;  %1438 = vmatmul.mubr.f32.gmra.mrb[122].mxu1 %v2568_v56 }
 0x131   :  { %1592 = vst [vmem:[#allocation5 + $0x1d8] sm:$0xff] %v774_v45  ;;  %1972 = vmatprep.mubr.msk.f32.mxu1 %vm232_vm0, %v2575_v59  ;;  %v473_v46 = vpop.f32.mrb[18].mxu0 }
 0x132   :  { %1596 = vst [vmem:[#allocation5 + $0x1f8] sm:$0xff] %v473_v46  ;;  %v475_v49 = vpop.f32.mrb[19].mxu0  ;;  %1160 = vmatmul.mubr.f32.gmra.mrb[124].mxu0 %v2584_v60  ;;  %v3217_v46 = vld [vmem:[#allocation17_spill] sm:$0xff] }
 0x133   :  { %v778_v50 = vpop.f32.mrb[18].mxu1  ;;  %1597 = vst [vmem:[#allocation5 + $0x200] sm:$0xff] %v475_v49  ;;  %1933 = vmatprep.mubr.msk.f32.mxu0 %vm232_vm0, %v2591_v63 }
 0x134   :  { %1598 = vst [vmem:[#allocation5 + $0x208] sm:$0xff] %v778_v50  ;;  %v780_v51 = vpop.f32.mrb[19].mxu1  ;;  %1443 = vmatmul.mubr.f32.gmra.mrb[124].mxu1 %v2584_v60  ;;  %v3218_v50 = vld [vmem:[#allocation18_spill] sm:$0xff] }
 0x135   :  { %1599 = vst [vmem:[#allocation5 + $0x210] sm:$0xff] %v780_v51  ;;  %1973 = vmatprep.mubr.msk.f32.mxu1 %vm232_vm0, %v2591_v63  ;;  %v479_v52 = vpop.f32.mrb[20].mxu0 }
 0x136   :  { %1603 = vst [vmem:[#allocation5 + $0x230] sm:$0xff] %v479_v52  ;;  %v481_v53 = vpop.f32.mrb[21].mxu0  ;;  %1166 = vmatmul.mubr.f32.gmra.mrb[126].mxu0 %v2600_v0 }
 0x137   :  { %v784_v55 = vpop.f32.mrb[20].mxu1  ;;  %1604 = vst [vmem:[#allocation5 + $0x238] sm:$0xff] %v481_v53  ;;  %1934 = vmatprep.mubr.msk.f32.mxu0 %vm232_vm0, %v2607_v1 }
 0x138   :  { %1605 = vst [vmem:[#allocation5 + $0x240] sm:$0xff] %v784_v55  ;;  %v786_v56 = vpop.f32.mrb[21].mxu1  ;;  %1448 = vmatmul.mubr.f32.gmra.mrb[126].mxu1 %v2600_v0  ;;  %v3219_v55 = vld [vmem:[#allocation19_spill] sm:$0xff] }
 0x139   :  { %1606 = vst [vmem:[#allocation5 + $0x248] sm:$0xff] %v786_v56  ;;  %1974 = vmatprep.mubr.msk.f32.mxu1 %vm232_vm0, %v2607_v1  ;;  %v485_v59 = vpop.f32.mrb[22].mxu0 }
 0x13a   :  { %1610 = vst [vmem:[#allocation5 + $0x268] sm:$0xff] %v485_v59  ;;  %v487_v60 = vpop.f32.mrb[23].mxu0  ;;  %1172 = vmatmul.mubr.f32.gmra.mrb[128].mxu0 %v2616_v4  ;;  %v3220_v59 = vld [vmem:[#allocation20_spill] sm:$0xff] }
 0x13b   :  { %v790_v63 = vpop.f32.mrb[22].mxu1  ;;  %1611 = vst [vmem:[#allocation5 + $0x270] sm:$0xff] %v487_v60  ;;  %1935 = vmatprep.mubr.msk.f32.mxu0 %vm232_vm0, %v2623_v5 }
 0x13c   :  { %1612 = vst [vmem:[#allocation5 + $0x278] sm:$0xff] %v790_v63  ;;  %v792_v23 = vpop.f32.mrb[23].mxu1  ;;  %1453 = vmatmul.mubr.f32.gmra.mrb[128].mxu1 %v2616_v4 }
 0x13d   :  { %1613 = vst [vmem:[#allocation5 + $0x280] sm:$0xff] %v792_v23  ;;  %1975 = vmatprep.mubr.msk.f32.mxu1 %vm232_vm0, %v2623_v5  ;;  %v491_v0 = vpop.f32.mrb[24].mxu0 }
 0x13e   :  { %1617 = vst [vmem:[#allocation5 + $0x2a0] sm:$0xff] %v491_v0  ;;  %v493_v1 = vpop.f32.mrb[25].mxu0  ;;  %1178 = vmatmul.mubr.f32.gmra.mrb[130].mxu0 %v2632_v6  ;;  %v3221_v0 = vld [vmem:[#allocation21_spill] sm:$0xff] }
 0x13f   :  { %v796_v54 = vpop.f32.mrb[24].mxu1  ;;  %1618 = vst [vmem:[#allocation5 + $0x2a8] sm:$0xff] %v493_v1  ;;  %1936 = vmatprep.mubr.msk.f32.mxu0 %vm232_vm0, %v2639_v7 }
 0x140   :  { %1619 = vst [vmem:[#allocation5 + $0x2b0] sm:$0xff] %v796_v54  ;;  %v798_v57 = vpop.f32.mrb[25].mxu1  ;;  %1458 = vmatmul.mubr.f32.gmra.mrb[130].mxu1 %v2632_v6  ;;  %v3222_v54 = vld [vmem:[#allocation22_spill] sm:$0xff] }
 0x141   :  { %1620 = vst [vmem:[#allocation5 + $0x2b8] sm:$0xff] %v798_v57  ;;  %1976 = vmatprep.mubr.msk.f32.mxu1 %vm232_vm0, %v2639_v7  ;;  %v497_v4 = vpop.f32.mrb[26].mxu0 }
 0x142   :  { %1624 = vst [vmem:[#allocation5 + $0x2d8] sm:$0xff] %v497_v4  ;;  %v499_v5 = vpop.f32.mrb[27].mxu0  ;;  %1184 = vmatmul.mubr.f32.gmra.mrb[132].mxu0 %v2648_v9 }
 0x143   :  { %v802_v2 = vpop.f32.mrb[26].mxu1  ;;  %1625 = vst [vmem:[#allocation5 + $0x2e0] sm:$0xff] %v499_v5  ;;  %1937 = vmatprep.mubr.msk.f32.mxu0 %vm232_vm0, %v2655_v10 }
 0x144   :  { %1626 = vst [vmem:[#allocation5 + $0x2e8] sm:$0xff] %v802_v2  ;;  %v804_v3 = vpop.f32.mrb[27].mxu1  ;;  %1463 = vmatmul.mubr.f32.gmra.mrb[132].mxu1 %v2648_v9  ;;  %v3223_v2 = vld [vmem:[#allocation23_spill] sm:$0xff] }
 0x145   :  { %1627 = vst [vmem:[#allocation5 + $0x2f0] sm:$0xff] %v804_v3  ;;  %1977 = vmatprep.mubr.msk.f32.mxu1 %vm232_vm0, %v2655_v10  ;;  %v503_v6 = vpop.f32.mrb[28].mxu0 }
 0x146   :  { %1631 = vst [vmem:[#allocation5 + $0x310] sm:$0xff] %v503_v6  ;;  %v505_v7 = vpop.f32.mrb[29].mxu0  ;;  %1190 = vmatmul.mubr.f32.gmra.mrb[134].mxu0 %v2664_v12 }
 0x147   :  { %v808_v13 = vpop.f32.mrb[28].mxu1  ;;  %1632 = vst [vmem:[#allocation5 + $0x318] sm:$0xff] %v505_v7  ;;  %1938 = vmatprep.mubr.msk.f32.mxu0 %vm232_vm0, %v2671_v15 }
 0x148   :  { %1633 = vst [vmem:[#allocation5 + $0x320] sm:$0xff] %v808_v13  ;;  %v810_v14 = vpop.f32.mrb[29].mxu1  ;;  %1468 = vmatmul.mubr.f32.gmra.mrb[134].mxu1 %v2664_v12 }
 0x149   :  { %1634 = vst [vmem:[#allocation5 + $0x328] sm:$0xff] %v810_v14  ;;  %1978 = vmatprep.mubr.msk.f32.mxu1 %vm232_vm0, %v2671_v15  ;;  %v509_v9 = vpop.f32.mrb[30].mxu0 }
 0x14a   :  { %1638 = vst [vmem:[#allocation5 + $0x348] sm:$0xff] %v509_v9  ;;  %v511_v10 = vpop.f32.mrb[31].mxu0  ;;  %1196 = vmatmul.mubr.f32.gmra.mrb[136].mxu0 %v2680_v16 }
 0x14b   :  { %v814_v25 = vpop.f32.mrb[30].mxu1  ;;  %1639 = vst [vmem:[#allocation5 + $0x350] sm:$0xff] %v511_v10  ;;  %1939 = vmatprep.mubr.msk.f32.mxu0 %vm232_vm0, %v2687_v17 }
 0x14c   :  { %1640 = vst [vmem:[#allocation5 + $0x358] sm:$0xff] %v814_v25  ;;  %v816_v26 = vpop.f32.mrb[31].mxu1  ;;  %1473 = vmatmul.mubr.f32.gmra.mrb[136].mxu1 %v2680_v16 }
 0x14d   :  { %1641 = vst [vmem:[#allocation5 + $0x360] sm:$0xff] %v816_v26  ;;  %1979 = vmatprep.mubr.msk.f32.mxu1 %vm232_vm0, %v2687_v17  ;;  %v515_v12 = vpop.f32.mrb[32].mxu0 }
 0x14e   :  { %1645 = vst [vmem:[#allocation5 + $0x380] sm:$0xff] %v515_v12  ;;  %v517_v15 = vpop.f32.mrb[33].mxu0  ;;  %1202 = vmatmul.mubr.f32.gmra.mrb[138].mxu0 %v2696_v18 }
 0x14f   :  { %v820_v36 = vpop.f32.mrb[32].mxu1  ;;  %1646 = vst [vmem:[#allocation5 + $0x388] sm:$0xff] %v517_v15  ;;  %1940 = vmatprep.mubr.msk.f32.mxu0 %vm232_vm0, %v3208_v47 }
 0x150   :  { %1647 = vst [vmem:[#allocation5 + $0x390] sm:$0xff] %v820_v36  ;;  %v822_v37 = vpop.f32.mrb[33].mxu1  ;;  %1478 = vmatmul.mubr.f32.gmra.mrb[138].mxu1 %v2696_v18 }
 0x151   :  { %1648 = vst [vmem:[#allocation5 + $0x398] sm:$0xff] %v822_v37  ;;  %1980 = vmatprep.mubr.msk.f32.mxu1 %vm232_vm0, %v3208_v47  ;;  %v521_v16 = vpop.f32.mrb[34].mxu0 }
 0x152   :  { %1652 = vst [vmem:[#allocation5 + $0x3b8] sm:$0xff] %v521_v16  ;;  %v523_v17 = vpop.f32.mrb[35].mxu0  ;;  %1208 = vmatmul.mubr.f32.gmra.mrb[140].mxu0 %v3209_v61 }
 0x153   :  { %v826_v48 = vpop.f32.mrb[34].mxu1  ;;  %1653 = vst [vmem:[#allocation5 + $0x3c0] sm:$0xff] %v523_v17  ;;  %1941 = vmatprep.mubr.msk.f32.mxu0 %vm232_vm0, %v3210_v8 }
 0x154   :  { %1654 = vst [vmem:[#allocation5 + $0x3c8] sm:$0xff] %v826_v48  ;;  %v828_v62 = vpop.f32.mrb[35].mxu1  ;;  %1483 = vmatmul.mubr.f32.gmra.mrb[140].mxu1 %v3209_v61 }
 0x155   :  { %1655 = vst [vmem:[#allocation5 + $0x3d0] sm:$0xff] %v828_v62  ;;  %1981 = vmatprep.mubr.msk.f32.mxu1 %vm232_vm0, %v3210_v8  ;;  %v527_v18 = vpop.f32.mrb[36].mxu0 }
 0x156   :  { %1659 = vst [vmem:[#allocation5 + $0x3f0] sm:$0xff] %v527_v18  ;;  %v529_v11 = vpop.f32.mrb[37].mxu0  ;;  %1214 = vmatmul.mubr.f32.gmra.mrb[142].mxu0 %v3211_v22 }
 0x157   :  { %v832_v21 = vpop.f32.mrb[36].mxu1  ;;  %1660 = vst [vmem:[#allocation5 + $0x3f8] sm:$0xff] %v529_v11  ;;  %1942 = vmatprep.mubr.msk.f32.mxu0 %vm232_vm0, %v3212_v29 }
 0x158   :  { %1661 = vst [vmem:[#allocation5 + $0x400] sm:$0xff] %v832_v21  ;;  %v834_v28 = vpop.f32.mrb[37].mxu1  ;;  %1488 = vmatmul.mubr.f32.gmra.mrb[142].mxu1 %v3211_v22 }
 0x159   :  { %1662 = vst [vmem:[#allocation5 + $0x408] sm:$0xff] %v834_v28  ;;  %1982 = vmatprep.mubr.msk.f32.mxu1 %vm232_vm0, %v3212_v29  ;;  %v533_v58 = vpop.f32.mrb[38].mxu0 }
 0x15a   :  { %1666 = vst [vmem:[#allocation5 + $0x428] sm:$0xff] %v533_v58  ;;  %v535_v30 = vpop.f32.mrb[39].mxu0  ;;  %1220 = vmatmul.mubr.f32.gmra.mrb[144].mxu0 %v3213_v32 }
 0x15b   :  { %v838_v31 = vpop.f32.mrb[38].mxu1  ;;  %1667 = vst [vmem:[#allocation5 + $0x430] sm:$0xff] %v535_v30  ;;  %1943 = vmatprep.mubr.msk.f32.mxu0 %vm232_vm0, %v3214_v34 }
 0x15c   :  { %1668 = vst [vmem:[#allocation5 + $0x438] sm:$0xff] %v838_v31  ;;  %v840_v33 = vpop.f32.mrb[39].mxu1  ;;  %1493 = vmatmul.mubr.f32.gmra.mrb[144].mxu1 %v3213_v32 }
 0x15d   :  { %1669 = vst [vmem:[#allocation5 + $0x440] sm:$0xff] %v840_v33  ;;  %1983 = vmatprep.mubr.msk.f32.mxu1 %vm232_vm0, %v3214_v34  ;;  %v539_v35 = vpop.f32.mrb[40].mxu0 }
 0x15e   :  { %1673 = vst [vmem:[#allocation5 + $0x460] sm:$0xff] %v539_v35  ;;  %v541_v38 = vpop.f32.mrb[41].mxu0  ;;  %1226 = vmatmul.mubr.f32.gmra.mrb[146].mxu0 %v3215_v40 }
 0x15f   :  { %v844_v39 = vpop.f32.mrb[40].mxu1  ;;  %1674 = vst [vmem:[#allocation5 + $0x468] sm:$0xff] %v541_v38  ;;  %1944 = vmatprep.mubr.msk.f32.mxu0 %vm232_vm0, %v3216_v42 }
 0x160   :  { %1675 = vst [vmem:[#allocation5 + $0x470] sm:$0xff] %v844_v39  ;;  %v846_v41 = vpop.f32.mrb[41].mxu1  ;;  %1498 = vmatmul.mubr.f32.gmra.mrb[146].mxu1 %v3215_v40 }
 0x161   :  { %1676 = vst [vmem:[#allocation5 + $0x478] sm:$0xff] %v846_v41  ;;  %1984 = vmatprep.mubr.msk.f32.mxu1 %vm232_vm0, %v3216_v42  ;;  %v545_v43 = vpop.f32.mrb[42].mxu0 }
 0x162   :  { %1680 = vst [vmem:[#allocation5 + $0x498] sm:$0xff] %v545_v43  ;;  %v547_v44 = vpop.f32.mrb[43].mxu0  ;;  %1232 = vmatmul.mubr.f32.gmra.mrb[148].mxu0 %v3217_v46 }
 0x163   :  { %v850_v45 = vpop.f32.mrb[42].mxu1  ;;  %1681 = vst [vmem:[#allocation5 + $0x4a0] sm:$0xff] %v547_v44  ;;  %1945 = vmatprep.mubr.msk.f32.mxu0 %vm232_vm0, %v3218_v50 }
 0x164   :  { %1682 = vst [vmem:[#allocation5 + $0x4a8] sm:$0xff] %v850_v45  ;;  %v852_v49 = vpop.f32.mrb[43].mxu1  ;;  %1503 = vmatmul.mubr.f32.gmra.mrb[148].mxu1 %v3217_v46 }
 0x165   :  { %1683 = vst [vmem:[#allocation5 + $0x4b0] sm:$0xff] %v852_v49  ;;  %1985 = vmatprep.mubr.msk.f32.mxu1 %vm232_vm0, %v3218_v50  ;;  %v551_v51 = vpop.f32.mrb[44].mxu0 }
 0x166   :  { %1687 = vst [vmem:[#allocation5 + $0x4d0] sm:$0xff] %v551_v51  ;;  %v553_v52 = vpop.f32.mrb[45].mxu0  ;;  %1238 = vmatmul.mubr.f32.gmra.mrb[150].mxu0 %v3219_v55 }
 0x167   :  { %v856_v53 = vpop.f32.mrb[44].mxu1  ;;  %1688 = vst [vmem:[#allocation5 + $0x4d8] sm:$0xff] %v553_v52  ;;  %1946 = vmatprep.mubr.msk.f32.mxu0 %vm232_vm0, %v3220_v59 }
 0x168   :  { %1689 = vst [vmem:[#allocation5 + $0x4e0] sm:$0xff] %v856_v53  ;;  %v858_v56 = vpop.f32.mrb[45].mxu1  ;;  %1508 = vmatmul.mubr.f32.gmra.mrb[150].mxu1 %v3219_v55 }
 0x169   :  { %1690 = vst [vmem:[#allocation5 + $0x4e8] sm:$0xff] %v858_v56  ;;  %1986 = vmatprep.mubr.msk.f32.mxu1 %vm232_vm0, %v3220_v59  ;;  %v557_v60 = vpop.f32.mrb[46].mxu0 }
 0x16a   :  { %1694 = vst [vmem:[#allocation5 + $0x508] sm:$0xff] %v557_v60  ;;  %v559_v63 = vpop.f32.mrb[47].mxu0  ;;  %1244 = vmatmul.mubr.f32.gmra.mrb[152].mxu0 %v3221_v0 }
 0x16b   :  { %v862_v23 = vpop.f32.mrb[46].mxu1  ;;  %1695 = vst [vmem:[#allocation5 + $0x510] sm:$0xff] %v559_v63  ;;  %1947 = vmatprep.mubr.msk.f32.mxu0 %vm232_vm0, %v3222_v54 }
 0x16c   :  { %1696 = vst [vmem:[#allocation5 + $0x518] sm:$0xff] %v862_v23  ;;  %v864_v1 = vpop.f32.mrb[47].mxu1  ;;  %1513 = vmatmul.mubr.f32.gmra.mrb[152].mxu1 %v3221_v0 }
 0x16d   :  { %1697 = vst [vmem:[#allocation5 + $0x520] sm:$0xff] %v864_v1  ;;  %1987 = vmatprep.mubr.msk.f32.mxu1 %vm232_vm0, %v3222_v54  ;;  %v563_v57 = vpop.f32.mrb[48].mxu0 }
 0x16e   :  { %1701 = vst [vmem:[#allocation5 + $0x540] sm:$0xff] %v563_v57  ;;  %v565_v4 = vpop.f32.mrb[49].mxu0  ;;  %1250 = vmatmul.mubr.f32.gmra.mrb[154].mxu0 %v3223_v2 }
 0x16f   :  { %v868_v5 = vpop.f32.mrb[48].mxu1  ;;  %1702 = vst [vmem:[#allocation5 + $0x548] sm:$0xff] %v565_v4  ;;  %1948 = vmatprep.mubr.msk.f32.mxu0 %vm232_vm0, %v2831_v19 }
 0x170   :  { %1703 = vst [vmem:[#allocation5 + $0x550] sm:$0xff] %v868_v5  ;;  %v870_v3 = vpop.f32.mrb[49].mxu1  ;;  %1518 = vmatmul.mubr.f32.gmra.mrb[154].mxu1 %v3223_v2 }
 0x171   :  { %1704 = vst [vmem:[#allocation5 + $0x558] sm:$0xff] %v870_v3  ;;  %1988 = vmatprep.mubr.msk.f32.mxu1 %vm232_vm0, %v2831_v19  ;;  %v569_v6 = vpop.f32.mrb[50].mxu0 }
 0x172   :  { %1708 = vst [vmem:[#allocation5 + $0x578] sm:$0xff] %v569_v6  ;;  %v571_v7 = vpop.f32.mrb[51].mxu0  ;;  %1256 = vmatmul.mubr.f32.gmra.mrb[156].mxu0 %v2840_v20 }
 0x173   :  { %v874_v13 = vpop.f32.mrb[50].mxu1  ;;  %1709 = vst [vmem:[#allocation5 + $0x580] sm:$0xff] %v571_v7  ;;  %1949 = vmatprep.mubr.msk.f32.mxu0 %vm232_vm0, %v2847_v24 }
 0x174   :  { %1710 = vst [vmem:[#allocation5 + $0x588] sm:$0xff] %v874_v13  ;;  %v876_v14 = vpop.f32.mrb[51].mxu1  ;;  %1523 = vmatmul.mubr.f32.gmra.mrb[156].mxu1 %v2840_v20 }
 0x175   :  { %1711 = vst [vmem:[#allocation5 + $0x590] sm:$0xff] %v876_v14  ;;  %1989 = vmatprep.mubr.msk.f32.mxu1 %vm232_vm0, %v2847_v24  ;;  %v575_v9 = vpop.f32.mrb[52].mxu0 }
 0x176   :  { %1715 = vst [vmem:[#allocation5 + $0x5b0] sm:$0xff] %v575_v9  ;;  %v577_v19 = vpop.f32.mrb[53].mxu0  ;;  %1262 = vmatmul.mubr.f32.gmra.mrb[158].mxu0 %v2856_v27 }
 0x177   :  { %v880_v10 = vpop.f32.mrb[52].mxu1  ;;  %1716 = vst [vmem:[#allocation5 + $0x5b8] sm:$0xff] %v577_v19 }
 0x178   :  { %1717 = vst [vmem:[#allocation5 + $0x5c0] sm:$0xff] %v880_v10  ;;  %v882_v25 = vpop.f32.mrb[53].mxu1  ;;  %1528 = vmatmul.mubr.f32.gmra.mrb[158].mxu1 %v2856_v27 }
 0x179   :  { %1718 = vst [vmem:[#allocation5 + $0x5c8] sm:$0xff] %v882_v25  ;;  %v581_v20 = vpop.f32.mrb[54].mxu0 }
 0x17a   :  { %1722 = vst [vmem:[#allocation5 + $0x5e8] sm:$0xff] %v581_v20  ;;  %v583_v26 = vpop.f32.mrb[55].mxu0 }
 0x17b   :  { %v886_v12 = vpop.f32.mrb[54].mxu1  ;;  %1723 = vst [vmem:[#allocation5 + $0x5f0] sm:$0xff] %v583_v26 }
 0x17c   :  { %1724 = vst [vmem:[#allocation5 + $0x5f8] sm:$0xff] %v886_v12  ;;  %v888_v15 = vpop.f32.mrb[55].mxu1 }
 0x17d   :  { %1725 = vst [vmem:[#allocation5 + $0x600] sm:$0xff] %v888_v15  ;;  %v587_v24 = vpop.f32.mrb[56].mxu0 }
 0x17e   :  { %1729 = vst [vmem:[#allocation5 + $0x620] sm:$0xff] %v587_v24  ;;  %v589_v36 = vpop.f32.mrb[57].mxu0 }
 0x17f   :  { %v892_v37 = vpop.f32.mrb[56].mxu1  ;;  %1730 = vst [vmem:[#allocation5 + $0x628] sm:$0xff] %v589_v36 }
 0x180   :  { %1731 = vst [vmem:[#allocation5 + $0x630] sm:$0xff] %v892_v37  ;;  %v894_v47 = vpop.f32.mrb[57].mxu1 }
 0x181   :  { %1732 = vst [vmem:[#allocation5 + $0x638] sm:$0xff] %v894_v47  ;;  %v593_v16 = vpop.f32.mrb[58].mxu0 }
 0x182   :  { %1736 = vst [vmem:[#allocation5 + $0x658] sm:$0xff] %v593_v16  ;;  %v595_v27 = vpop.f32.mrb[59].mxu0 }
 0x183   :  { %v898_v17 = vpop.f32.mrb[58].mxu1  ;;  %1737 = vst [vmem:[#allocation5 + $0x660] sm:$0xff] %v595_v27 }
 0x184   :  { %1738 = vst [vmem:[#allocation5 + $0x668] sm:$0xff] %v898_v17  ;;  %v900_v48 = vpop.f32.mrb[59].mxu1 }
 0x185   :  { %1739 = vst [vmem:[#allocation5 + $0x670] sm:$0xff] %v900_v48  ;;  %v599_v61 = vpop.f32.mrb[60].mxu0 }
 0x186   :  { %1743 = vst [vmem:[#allocation5 + $0x690] sm:$0xff] %v599_v61  ;;  %v601_v62 = vpop.f32.mrb[61].mxu0 }
 0x187   :  { %v904_v8 = vpop.f32.mrb[60].mxu1  ;;  %1744 = vst [vmem:[#allocation5 + $0x698] sm:$0xff] %v601_v62 }
 0x188   :  { %1745 = vst [vmem:[#allocation5 + $0x6a0] sm:$0xff] %v904_v8  ;;  %v906_v18 = vpop.f32.mrb[61].mxu1 }
 0x189   :  { %1746 = vst [vmem:[#allocation5 + $0x6a8] sm:$0xff] %v906_v18  ;;  %v605_v11 = vpop.f32.mrb[62].mxu0 }
 0x18a   :  { %1750 = vst [vmem:[#allocation5 + $0x6c8] sm:$0xff] %v605_v11  ;;  %v607_v21 = vpop.f32.mrb[63].mxu0 }
 0x18b   :  { %v910_v22 = vpop.f32.mrb[62].mxu1  ;;  %1751 = vst [vmem:[#allocation5 + $0x6d0] sm:$0xff] %v607_v21 }
 0x18c   :  { %1752 = vst [vmem:[#allocation5 + $0x6d8] sm:$0xff] %v910_v22  ;;  %v912_v28 = vpop.f32.mrb[63].mxu1 }
 0x18d   :  { %1753 = vst [vmem:[#allocation5 + $0x6e0] sm:$0xff] %v912_v28  ;;  %v611_v29 = vpop.f32.mrb[64].mxu0 }
 0x18e   :  { %1757 = vst [vmem:[#allocation5 + $0x700] sm:$0xff] %v611_v29  ;;  %v613_v58 = vpop.f32.mrb[65].mxu0 }
 0x18f   :  { %v916_v30 = vpop.f32.mrb[64].mxu1  ;;  %1758 = vst [vmem:[#allocation5 + $0x708] sm:$0xff] %v613_v58 }
 0x190   :  { %1759 = vst [vmem:[#allocation5 + $0x710] sm:$0xff] %v916_v30  ;;  %v918_v31 = vpop.f32.mrb[65].mxu1 }
 0x191   :  { %1760 = vst [vmem:[#allocation5 + $0x718] sm:$0xff] %v918_v31  ;;  %v617_v32 = vpop.f32.mrb[66].mxu0 }
 0x192   :  { %1764 = vst [vmem:[#allocation5 + $0x738] sm:$0xff] %v617_v32  ;;  %v619_v33 = vpop.f32.mrb[67].mxu0 }
 0x193   :  { %v922_v34 = vpop.f32.mrb[66].mxu1  ;;  %1765 = vst [vmem:[#allocation5 + $0x740] sm:$0xff] %v619_v33 }
 0x194   :  { %1766 = vst [vmem:[#allocation5 + $0x748] sm:$0xff] %v922_v34  ;;  %v924_v35 = vpop.f32.mrb[67].mxu1 }
 0x195   :  { %1767 = vst [vmem:[#allocation5 + $0x750] sm:$0xff] %v924_v35  ;;  %v623_v38 = vpop.f32.mrb[68].mxu0 }
 0x196   :  { %1771 = vst [vmem:[#allocation5 + $0x770] sm:$0xff] %v623_v38  ;;  %v625_v39 = vpop.f32.mrb[69].mxu0 }
 0x197   :  { %v928_v40 = vpop.f32.mrb[68].mxu1  ;;  %1772 = vst [vmem:[#allocation5 + $0x778] sm:$0xff] %v625_v39 }
 0x198   :  { %1773 = vst [vmem:[#allocation5 + $0x780] sm:$0xff] %v928_v40  ;;  %v930_v41 = vpop.f32.mrb[69].mxu1 }
 0x199   :  { %1774 = vst [vmem:[#allocation5 + $0x788] sm:$0xff] %v930_v41  ;;  %v629_v42 = vpop.f32.mrb[70].mxu0 }
 0x19a   :  { %1778 = vst [vmem:[#allocation5 + $0x7a8] sm:$0xff] %v629_v42  ;;  %v631_v43 = vpop.f32.mrb[71].mxu0 }
 0x19b   :  { %v934_v44 = vpop.f32.mrb[70].mxu1  ;;  %1779 = vst [vmem:[#allocation5 + $0x7b0] sm:$0xff] %v631_v43 }
 0x19c   :  { %1780 = vst [vmem:[#allocation5 + $0x7b8] sm:$0xff] %v934_v44  ;;  %v936_v45 = vpop.f32.mrb[71].mxu1 }
 0x19d   :  { %1781 = vst [vmem:[#allocation5 + $0x7c0] sm:$0xff] %v936_v45  ;;  %v635_v46 = vpop.f32.mrb[72].mxu0 }
 0x19e   :  { %1785 = vst [vmem:[#allocation5 + $0x7e0] sm:$0xff] %v635_v46  ;;  %v637_v49 = vpop.f32.mrb[73].mxu0 }
 0x19f   :  { %v940_v50 = vpop.f32.mrb[72].mxu1  ;;  %1786 = vst [vmem:[#allocation5 + $0x7e8] sm:$0xff] %v637_v49 }
 0x1a0   :  { %1787 = vst [vmem:[#allocation5 + $0x7f0] sm:$0xff] %v940_v50  ;;  %v942_v51 = vpop.f32.mrb[73].mxu1 }
 0x1a1   :  { %1788 = vst [vmem:[#allocation5 + $0x7f8] sm:$0xff] %v942_v51  ;;  %v641_v52 = vpop.f32.mrb[74].mxu0 }
 0x1a2   :  { %1792 = vst [vmem:[#allocation5 + $0x818] sm:$0xff] %v641_v52  ;;  %v643_v53 = vpop.f32.mrb[75].mxu0 }
 0x1a3   :  { %v946_v55 = vpop.f32.mrb[74].mxu1  ;;  %1793 = vst [vmem:[#allocation5 + $0x820] sm:$0xff] %v643_v53 }
 0x1a4   :  { %1794 = vst [vmem:[#allocation5 + $0x828] sm:$0xff] %v946_v55  ;;  %v948_v56 = vpop.f32.mrb[75].mxu1 }
 0x1a5   :  { %1795 = vst [vmem:[#allocation5 + $0x830] sm:$0xff] %v948_v56  ;;  %v647_v59 = vpop.f32.mrb[76].mxu0 }
 0x1a6   :  { %1799 = vst [vmem:[#allocation5 + $0x850] sm:$0xff] %v647_v59  ;;  %v649_v60 = vpop.f32.mrb[77].mxu0 }
 0x1a7   :  { %v952_v63 = vpop.f32.mrb[76].mxu1  ;;  %1800 = vst [vmem:[#allocation5 + $0x858] sm:$0xff] %v649_v60 }
 0x1a8   :  { %1801 = vst [vmem:[#allocation5 + $0x860] sm:$0xff] %v952_v63  ;;  %v954_v23 = vpop.f32.mrb[77].mxu1 }
 0x1a9   :  { %1802 = vst [vmem:[#allocation5 + $0x868] sm:$0xff] %v954_v23  ;;  %v653_v0 = vpop.f32.mrb[78].mxu0 }
 0x1aa   :  { %1806 = vst [vmem:[#allocation5 + $0x888] sm:$0xff] %v653_v0  ;;  %v655_v1 = vpop.f32.mrb[79].mxu0 }
 0x1ab   :  { %v958_v54 = vpop.f32.mrb[78].mxu1  ;;  %1807 = vst [vmem:[#allocation5 + $0x890] sm:$0xff] %v655_v1 }
 0x1ac   :  { %1808 = vst [vmem:[#allocation5 + $0x898] sm:$0xff] %v958_v54  ;;  %v960_v57 = vpop.f32.mrb[79].mxu1 }
 0x1ad   :  { %1809 = vst [vmem:[#allocation5 + $0x8a0] sm:$0xff] %v960_v57  ;;  %v1029_v4 = vpop.f32.mrb[80].mxu0 }
 0x1ae   :  { %1537 = vst [vmem:[#allocation5 + $0x20] sm:$0xff] %v1029_v4  ;;  %v1031_v5 = vpop.f32.mrb[81].mxu0 }
 0x1af   :  { %v1334_v2 = vpop.f32.mrb[80].mxu1  ;;  %1538 = vst [vmem:[#allocation5 + $0x28] sm:$0xff] %v1031_v5 }
 0x1b0   :  { %1539 = vst.msk [vmem:[#allocation5 + $0x30] sm:$0xff] %vm232_vm0, %v1334_v2  ;;  %v1336_v3 = vpop.f32.mrb[81].mxu1 }
 0x1b1   :  { %v1035_v6 = vpop.f32.mrb[82].mxu0 }
 0x1b2   :  { %1544 = vst [vmem:[#allocation5 + $0x58] sm:$0xff] %v1035_v6  ;;  %v1037_v7 = vpop.f32.mrb[83].mxu0 }
 0x1b3   :  { %v1339_v13 = vpop.f32.mrb[82].mxu1  ;;  %1545 = vst [vmem:[#allocation5 + $0x60] sm:$0xff] %v1037_v7 }
 0x1b4   :  { %1546 = vst.msk [vmem:[#allocation5 + $0x68] sm:$0xff] %vm232_vm0, %v1339_v13  ;;  %v1341_v14 = vpop.f32.mrb[83].mxu1 }
 0x1b5   :  { %v1041_v9 = vpop.f32.mrb[84].mxu0 }
 0x1b6   :  { %1551 = vst [vmem:[#allocation5 + $0x90] sm:$0xff] %v1041_v9  ;;  %v1043_v19 = vpop.f32.mrb[85].mxu0 }
 0x1b7   :  { %v1344_v10 = vpop.f32.mrb[84].mxu1  ;;  %1552 = vst [vmem:[#allocation5 + $0x98] sm:$0xff] %v1043_v19 }
 0x1b8   :  { %1553 = vst.msk [vmem:[#allocation5 + $0xa0] sm:$0xff] %vm232_vm0, %v1344_v10  ;;  %v1346_v25 = vpop.f32.mrb[85].mxu1 }
 0x1b9   :  { %v1047_v20 = vpop.f32.mrb[86].mxu0 }
 0x1ba   :  { %1558 = vst [vmem:[#allocation5 + $0xc8] sm:$0xff] %v1047_v20  ;;  %v1049_v26 = vpop.f32.mrb[87].mxu0 }
 0x1bb   :  { %v1349_v12 = vpop.f32.mrb[86].mxu1  ;;  %1559 = vst [vmem:[#allocation5 + $0xd0] sm:$0xff] %v1049_v26 }
 0x1bc   :  { %1560 = vst.msk [vmem:[#allocation5 + $0xd8] sm:$0xff] %vm232_vm0, %v1349_v12  ;;  %v1351_v15 = vpop.f32.mrb[87].mxu1 }
 0x1bd   :  { %v1053_v24 = vpop.f32.mrb[88].mxu0 }
 0x1be   :  { %1565 = vst [vmem:[#allocation5 + $0x100] sm:$0xff] %v1053_v24  ;;  %v1055_v36 = vpop.f32.mrb[89].mxu0 }
 0x1bf   :  { %v1354_v37 = vpop.f32.mrb[88].mxu1  ;;  %1566 = vst [vmem:[#allocation5 + $0x108] sm:$0xff] %v1055_v36 }
 0x1c0   :  { %1567 = vst.msk [vmem:[#allocation5 + $0x110] sm:$0xff] %vm232_vm0, %v1354_v37  ;;  %v1356_v47 = vpop.f32.mrb[89].mxu1 }
 0x1c1   :  { %v1059_v16 = vpop.f32.mrb[90].mxu0 }
 0x1c2   :  { %1572 = vst [vmem:[#allocation5 + $0x138] sm:$0xff] %v1059_v16  ;;  %v1061_v27 = vpop.f32.mrb[91].mxu0 }
 0x1c3   :  { %v1359_v17 = vpop.f32.mrb[90].mxu1  ;;  %1573 = vst [vmem:[#allocation5 + $0x140] sm:$0xff] %v1061_v27 }
 0x1c4   :  { %1574 = vst.msk [vmem:[#allocation5 + $0x148] sm:$0xff] %vm232_vm0, %v1359_v17  ;;  %v1361_v48 = vpop.f32.mrb[91].mxu1 }
 0x1c5   :  { %v1065_v61 = vpop.f32.mrb[92].mxu0 }
 0x1c6   :  { %1579 = vst [vmem:[#allocation5 + $0x170] sm:$0xff] %v1065_v61  ;;  %v1067_v62 = vpop.f32.mrb[93].mxu0 }
 0x1c7   :  { %v1364_v8 = vpop.f32.mrb[92].mxu1  ;;  %1580 = vst [vmem:[#allocation5 + $0x178] sm:$0xff] %v1067_v62 }
 0x1c8   :  { %1581 = vst.msk [vmem:[#allocation5 + $0x180] sm:$0xff] %vm232_vm0, %v1364_v8  ;;  %v1366_v18 = vpop.f32.mrb[93].mxu1 }
 0x1c9   :  { %v1071_v11 = vpop.f32.mrb[94].mxu0 }
 0x1ca   :  { %1586 = vst [vmem:[#allocation5 + $0x1a8] sm:$0xff] %v1071_v11  ;;  %v1073_v21 = vpop.f32.mrb[95].mxu0 }
 0x1cb   :  { %v1369_v22 = vpop.f32.mrb[94].mxu1  ;;  %1587 = vst [vmem:[#allocation5 + $0x1b0] sm:$0xff] %v1073_v21 }
 0x1cc   :  { %1588 = vst.msk [vmem:[#allocation5 + $0x1b8] sm:$0xff] %vm232_vm0, %v1369_v22  ;;  %v1371_v28 = vpop.f32.mrb[95].mxu1 }
 0x1cd   :  { %v1077_v29 = vpop.f32.mrb[96].mxu0 }
 0x1ce   :  { %1593 = vst [vmem:[#allocation5 + $0x1e0] sm:$0xff] %v1077_v29  ;;  %v1079_v58 = vpop.f32.mrb[97].mxu0 }
 0x1cf   :  { %v1374_v30 = vpop.f32.mrb[96].mxu1  ;;  %1594 = vst [vmem:[#allocation5 + $0x1e8] sm:$0xff] %v1079_v58 }
 0x1d0   :  { %1595 = vst.msk [vmem:[#allocation5 + $0x1f0] sm:$0xff] %vm232_vm0, %v1374_v30  ;;  %v1376_v31 = vpop.f32.mrb[97].mxu1 }
 0x1d1   :  { %v1083_v32 = vpop.f32.mrb[98].mxu0 }
 0x1d2   :  { %1600 = vst [vmem:[#allocation5 + $0x218] sm:$0xff] %v1083_v32  ;;  %v1085_v33 = vpop.f32.mrb[99].mxu0 }
 0x1d3   :  { %v1379_v34 = vpop.f32.mrb[98].mxu1  ;;  %1601 = vst [vmem:[#allocation5 + $0x220] sm:$0xff] %v1085_v33 }
 0x1d4   :  { %1602 = vst.msk [vmem:[#allocation5 + $0x228] sm:$0xff] %vm232_vm0, %v1379_v34  ;;  %v1381_v35 = vpop.f32.mrb[99].mxu1 }
 0x1d5   :  { %v1089_v38 = vpop.f32.mrb[100].mxu0 }
 0x1d6   :  { %1607 = vst [vmem:[#allocation5 + $0x250] sm:$0xff] %v1089_v38  ;;  %v1091_v39 = vpop.f32.mrb[101].mxu0 }
 0x1d7   :  { %v1384_v40 = vpop.f32.mrb[100].mxu1  ;;  %1608 = vst [vmem:[#allocation5 + $0x258] sm:$0xff] %v1091_v39 }
 0x1d8   :  { %1609 = vst.msk [vmem:[#allocation5 + $0x260] sm:$0xff] %vm232_vm0, %v1384_v40  ;;  %v1386_v41 = vpop.f32.mrb[101].mxu1 }
 0x1d9   :  { %v1095_v42 = vpop.f32.mrb[102].mxu0 }
 0x1da   :  { %1614 = vst [vmem:[#allocation5 + $0x288] sm:$0xff] %v1095_v42  ;;  %v1097_v43 = vpop.f32.mrb[103].mxu0 }
 0x1db   :  { %v1389_v44 = vpop.f32.mrb[102].mxu1  ;;  %1615 = vst [vmem:[#allocation5 + $0x290] sm:$0xff] %v1097_v43 }
 0x1dc   :  { %1616 = vst.msk [vmem:[#allocation5 + $0x298] sm:$0xff] %vm232_vm0, %v1389_v44  ;;  %v1391_v45 = vpop.f32.mrb[103].mxu1 }
 0x1dd   :  { %v1101_v46 = vpop.f32.mrb[104].mxu0 }
 0x1de   :  { %1621 = vst [vmem:[#allocation5 + $0x2c0] sm:$0xff] %v1101_v46  ;;  %v1103_v49 = vpop.f32.mrb[105].mxu0 }
 0x1df   :  { %v1394_v50 = vpop.f32.mrb[104].mxu1  ;;  %1622 = vst [vmem:[#allocation5 + $0x2c8] sm:$0xff] %v1103_v49 }
 0x1e0   :  { %1623 = vst.msk [vmem:[#allocation5 + $0x2d0] sm:$0xff] %vm232_vm0, %v1394_v50  ;;  %v1396_v51 = vpop.f32.mrb[105].mxu1 }
 0x1e1   :  { %v1107_v52 = vpop.f32.mrb[106].mxu0 }
 0x1e2   :  { %1628 = vst [vmem:[#allocation5 + $0x2f8] sm:$0xff] %v1107_v52  ;;  %v1109_v53 = vpop.f32.mrb[107].mxu0 }
 0x1e3   :  { %v1399_v55 = vpop.f32.mrb[106].mxu1  ;;  %1629 = vst [vmem:[#allocation5 + $0x300] sm:$0xff] %v1109_v53 }
 0x1e4   :  { %1630 = vst.msk [vmem:[#allocation5 + $0x308] sm:$0xff] %vm232_vm0, %v1399_v55  ;;  %v1401_v56 = vpop.f32.mrb[107].mxu1 }
 0x1e5   :  { %v1113_v59 = vpop.f32.mrb[108].mxu0 }
 0x1e6   :  { %1635 = vst [vmem:[#allocation5 + $0x330] sm:$0xff] %v1113_v59  ;;  %v1115_v60 = vpop.f32.mrb[109].mxu0 }
 0x1e7   :  { %v1404_v63 = vpop.f32.mrb[108].mxu1  ;;  %1636 = vst [vmem:[#allocation5 + $0x338] sm:$0xff] %v1115_v60 }
 0x1e8   :  { %1637 = vst.msk [vmem:[#allocation5 + $0x340] sm:$0xff] %vm232_vm0, %v1404_v63  ;;  %v1406_v23 = vpop.f32.mrb[109].mxu1 }
 0x1e9   :  { %v1119_v0 = vpop.f32.mrb[110].mxu0 }
 0x1ea   :  { %1642 = vst [vmem:[#allocation5 + $0x368] sm:$0xff] %v1119_v0  ;;  %v1121_v1 = vpop.f32.mrb[111].mxu0 }
 0x1eb   :  { %v1409_v54 = vpop.f32.mrb[110].mxu1  ;;  %1643 = vst [vmem:[#allocation5 + $0x370] sm:$0xff] %v1121_v1 }
 0x1ec   :  { %1644 = vst.msk [vmem:[#allocation5 + $0x378] sm:$0xff] %vm232_vm0, %v1409_v54  ;;  %v1411_v57 = vpop.f32.mrb[111].mxu1 }
 0x1ed   :  { %v1125_v4 = vpop.f32.mrb[112].mxu0 }
 0x1ee   :  { %1649 = vst [vmem:[#allocation5 + $0x3a0] sm:$0xff] %v1125_v4  ;;  %v1127_v5 = vpop.f32.mrb[113].mxu0 }
 0x1ef   :  { %v1414_v2 = vpop.f32.mrb[112].mxu1  ;;  %1650 = vst [vmem:[#allocation5 + $0x3a8] sm:$0xff] %v1127_v5 }
 0x1f0   :  { %1651 = vst.msk [vmem:[#allocation5 + $0x3b0] sm:$0xff] %vm232_vm0, %v1414_v2  ;;  %v1416_v3 = vpop.f32.mrb[113].mxu1 }
 0x1f1   :  { %v1131_v6 = vpop.f32.mrb[114].mxu0 }
 0x1f2   :  { %1656 = vst [vmem:[#allocation5 + $0x3d8] sm:$0xff] %v1131_v6  ;;  %v1133_v7 = vpop.f32.mrb[115].mxu0 }
 0x1f3   :  { %v1419_v13 = vpop.f32.mrb[114].mxu1  ;;  %1657 = vst [vmem:[#allocation5 + $0x3e0] sm:$0xff] %v1133_v7 }
 0x1f4   :  { %1658 = vst.msk [vmem:[#allocation5 + $0x3e8] sm:$0xff] %vm232_vm0, %v1419_v13  ;;  %v1421_v14 = vpop.f32.mrb[115].mxu1 }
 0x1f5   :  { %v1137_v9 = vpop.f32.mrb[116].mxu0 }
 0x1f6   :  { %1663 = vst [vmem:[#allocation5 + $0x410] sm:$0xff] %v1137_v9  ;;  %v1139_v19 = vpop.f32.mrb[117].mxu0 }
 0x1f7   :  { %v1424_v10 = vpop.f32.mrb[116].mxu1  ;;  %1664 = vst [vmem:[#allocation5 + $0x418] sm:$0xff] %v1139_v19 }
 0x1f8   :  { %1665 = vst.msk [vmem:[#allocation5 + $0x420] sm:$0xff] %vm232_vm0, %v1424_v10  ;;  %v1426_v25 = vpop.f32.mrb[117].mxu1 }
 0x1f9   :  { %v1143_v20 = vpop.f32.mrb[118].mxu0 }
 0x1fa   :  { %1670 = vst [vmem:[#allocation5 + $0x448] sm:$0xff] %v1143_v20  ;;  %v1145_v26 = vpop.f32.mrb[119].mxu0 }
 0x1fb   :  { %v1429_v12 = vpop.f32.mrb[118].mxu1  ;;  %1671 = vst [vmem:[#allocation5 + $0x450] sm:$0xff] %v1145_v26 }
 0x1fc   :  { %1672 = vst.msk [vmem:[#allocation5 + $0x458] sm:$0xff] %vm232_vm0, %v1429_v12  ;;  %v1431_v15 = vpop.f32.mrb[119].mxu1 }
 0x1fd   :  { %v1149_v24 = vpop.f32.mrb[120].mxu0 }
 0x1fe   :  { %1677 = vst [vmem:[#allocation5 + $0x480] sm:$0xff] %v1149_v24  ;;  %v1151_v36 = vpop.f32.mrb[121].mxu0 }
 0x1ff   :  { %v1434_v37 = vpop.f32.mrb[120].mxu1  ;;  %1678 = vst [vmem:[#allocation5 + $0x488] sm:$0xff] %v1151_v36 }
 0x200   :  { %1679 = vst.msk [vmem:[#allocation5 + $0x490] sm:$0xff] %vm232_vm0, %v1434_v37  ;;  %v1436_v47 = vpop.f32.mrb[121].mxu1 }
 0x201   :  { %v1155_v16 = vpop.f32.mrb[122].mxu0 }
 0x202   :  { %1684 = vst [vmem:[#allocation5 + $0x4b8] sm:$0xff] %v1155_v16  ;;  %v1157_v27 = vpop.f32.mrb[123].mxu0 }
 0x203   :  { %v1439_v17 = vpop.f32.mrb[122].mxu1  ;;  %1685 = vst [vmem:[#allocation5 + $0x4c0] sm:$0xff] %v1157_v27 }
 0x204   :  { %1686 = vst.msk [vmem:[#allocation5 + $0x4c8] sm:$0xff] %vm232_vm0, %v1439_v17  ;;  %v1441_v48 = vpop.f32.mrb[123].mxu1 }
 0x205   :  { %v1161_v61 = vpop.f32.mrb[124].mxu0 }
 0x206   :  { %1691 = vst [vmem:[#allocation5 + $0x4f0] sm:$0xff] %v1161_v61  ;;  %v1163_v62 = vpop.f32.mrb[125].mxu0 }
 0x207   :  { %v1444_v8 = vpop.f32.mrb[124].mxu1  ;;  %1692 = vst [vmem:[#allocation5 + $0x4f8] sm:$0xff] %v1163_v62 }
 0x208   :  { %1693 = vst.msk [vmem:[#allocation5 + $0x500] sm:$0xff] %vm232_vm0, %v1444_v8  ;;  %v1446_v18 = vpop.f32.mrb[125].mxu1 }
 0x209   :  { %v1167_v11 = vpop.f32.mrb[126].mxu0 }
 0x20a   :  { %1698 = vst [vmem:[#allocation5 + $0x528] sm:$0xff] %v1167_v11  ;;  %v1169_v21 = vpop.f32.mrb[127].mxu0 }
 0x20b   :  { %v1449_v22 = vpop.f32.mrb[126].mxu1  ;;  %1699 = vst [vmem:[#allocation5 + $0x530] sm:$0xff] %v1169_v21 }
 0x20c   :  { %1700 = vst.msk [vmem:[#allocation5 + $0x538] sm:$0xff] %vm232_vm0, %v1449_v22  ;;  %v1451_v28 = vpop.f32.mrb[127].mxu1 }
 0x20d   :  { %v1173_v29 = vpop.f32.mrb[128].mxu0 }
 0x20e   :  { %1705 = vst [vmem:[#allocation5 + $0x560] sm:$0xff] %v1173_v29  ;;  %v1175_v58 = vpop.f32.mrb[129].mxu0 }
 0x20f   :  { %v1454_v30 = vpop.f32.mrb[128].mxu1  ;;  %1706 = vst [vmem:[#allocation5 + $0x568] sm:$0xff] %v1175_v58 }
 0x210   :  { %1707 = vst.msk [vmem:[#allocation5 + $0x570] sm:$0xff] %vm232_vm0, %v1454_v30  ;;  %v1456_v31 = vpop.f32.mrb[129].mxu1 }
 0x211   :  { %v1179_v32 = vpop.f32.mrb[130].mxu0 }
 0x212   :  { %1712 = vst [vmem:[#allocation5 + $0x598] sm:$0xff] %v1179_v32  ;;  %v1181_v33 = vpop.f32.mrb[131].mxu0 }
 0x213   :  { %v1459_v34 = vpop.f32.mrb[130].mxu1  ;;  %1713 = vst [vmem:[#allocation5 + $0x5a0] sm:$0xff] %v1181_v33 }
 0x214   :  { %1714 = vst.msk [vmem:[#allocation5 + $0x5a8] sm:$0xff] %vm232_vm0, %v1459_v34  ;;  %v1461_v35 = vpop.f32.mrb[131].mxu1 }
 0x215   :  { %v1185_v38 = vpop.f32.mrb[132].mxu0 }
 0x216   :  { %1719 = vst [vmem:[#allocation5 + $0x5d0] sm:$0xff] %v1185_v38  ;;  %v1187_v39 = vpop.f32.mrb[133].mxu0 }
 0x217   :  { %v1464_v40 = vpop.f32.mrb[132].mxu1  ;;  %1720 = vst [vmem:[#allocation5 + $0x5d8] sm:$0xff] %v1187_v39 }
 0x218   :  { %1721 = vst.msk [vmem:[#allocation5 + $0x5e0] sm:$0xff] %vm232_vm0, %v1464_v40  ;;  %v1466_v41 = vpop.f32.mrb[133].mxu1 }
 0x219   :  { %v1191_v42 = vpop.f32.mrb[134].mxu0 }
 0x21a   :  { %1726 = vst [vmem:[#allocation5 + $0x608] sm:$0xff] %v1191_v42  ;;  %v1193_v43 = vpop.f32.mrb[135].mxu0 }
 0x21b   :  { %v1469_v44 = vpop.f32.mrb[134].mxu1  ;;  %1727 = vst [vmem:[#allocation5 + $0x610] sm:$0xff] %v1193_v43 }
 0x21c   :  { %1728 = vst.msk [vmem:[#allocation5 + $0x618] sm:$0xff] %vm232_vm0, %v1469_v44  ;;  %v1471_v45 = vpop.f32.mrb[135].mxu1 }
 0x21d   :  { %v1197_v46 = vpop.f32.mrb[136].mxu0 }
 0x21e   :  { %1733 = vst [vmem:[#allocation5 + $0x640] sm:$0xff] %v1197_v46  ;;  %v1199_v49 = vpop.f32.mrb[137].mxu0 }
 0x21f   :  { %v1474_v50 = vpop.f32.mrb[136].mxu1  ;;  %1734 = vst [vmem:[#allocation5 + $0x648] sm:$0xff] %v1199_v49 }
 0x220   :  { %1735 = vst.msk [vmem:[#allocation5 + $0x650] sm:$0xff] %vm232_vm0, %v1474_v50  ;;  %v1476_v51 = vpop.f32.mrb[137].mxu1 }
 0x221   :  { %v1203_v52 = vpop.f32.mrb[138].mxu0 }
 0x222   :  { %1740 = vst [vmem:[#allocation5 + $0x678] sm:$0xff] %v1203_v52  ;;  %v1205_v53 = vpop.f32.mrb[139].mxu0 }
 0x223   :  { %v1479_v55 = vpop.f32.mrb[138].mxu1  ;;  %1741 = vst [vmem:[#allocation5 + $0x680] sm:$0xff] %v1205_v53 }
 0x224   :  { %1742 = vst.msk [vmem:[#allocation5 + $0x688] sm:$0xff] %vm232_vm0, %v1479_v55  ;;  %v1481_v56 = vpop.f32.mrb[139].mxu1 }
 0x225   :  { %v1209_v59 = vpop.f32.mrb[140].mxu0 }
 0x226   :  { %1747 = vst [vmem:[#allocation5 + $0x6b0] sm:$0xff] %v1209_v59  ;;  %v1211_v60 = vpop.f32.mrb[141].mxu0 }
 0x227   :  { %v1484_v63 = vpop.f32.mrb[140].mxu1  ;;  %1748 = vst [vmem:[#allocation5 + $0x6b8] sm:$0xff] %v1211_v60 }
 0x228   :  { %1749 = vst.msk [vmem:[#allocation5 + $0x6c0] sm:$0xff] %vm232_vm0, %v1484_v63  ;;  %v1486_v23 = vpop.f32.mrb[141].mxu1 }
 0x229   :  { %v1215_v0 = vpop.f32.mrb[142].mxu0 }
 0x22a   :  { %1754 = vst [vmem:[#allocation5 + $0x6e8] sm:$0xff] %v1215_v0  ;;  %v1217_v1 = vpop.f32.mrb[143].mxu0 }
 0x22b   :  { %v1489_v54 = vpop.f32.mrb[142].mxu1  ;;  %1755 = vst [vmem:[#allocation5 + $0x6f0] sm:$0xff] %v1217_v1 }
 0x22c   :  { %1756 = vst.msk [vmem:[#allocation5 + $0x6f8] sm:$0xff] %vm232_vm0, %v1489_v54  ;;  %v1491_v57 = vpop.f32.mrb[143].mxu1 }
 0x22d   :  { %v1221_v4 = vpop.f32.mrb[144].mxu0 }
 0x22e   :  { %1761 = vst [vmem:[#allocation5 + $0x720] sm:$0xff] %v1221_v4  ;;  %v1223_v5 = vpop.f32.mrb[145].mxu0 }
 0x22f   :  { %v1494_v2 = vpop.f32.mrb[144].mxu1  ;;  %1762 = vst [vmem:[#allocation5 + $0x728] sm:$0xff] %v1223_v5 }
 0x230   :  { %1763 = vst.msk [vmem:[#allocation5 + $0x730] sm:$0xff] %vm232_vm0, %v1494_v2  ;;  %v1496_v3 = vpop.f32.mrb[145].mxu1 }
 0x231   :  { %v1227_v6 = vpop.f32.mrb[146].mxu0 }
 0x232   :  { %1768 = vst [vmem:[#allocation5 + $0x758] sm:$0xff] %v1227_v6  ;;  %v1229_v7 = vpop.f32.mrb[147].mxu0 }
 0x233   :  { %v1499_v13 = vpop.f32.mrb[146].mxu1  ;;  %1769 = vst [vmem:[#allocation5 + $0x760] sm:$0xff] %v1229_v7 }
 0x234   :  { %1770 = vst.msk [vmem:[#allocation5 + $0x768] sm:$0xff] %vm232_vm0, %v1499_v13  ;;  %v1501_v14 = vpop.f32.mrb[147].mxu1 }
 0x235   :  { %v1233_v9 = vpop.f32.mrb[148].mxu0 }
 0x236   :  { %1775 = vst [vmem:[#allocation5 + $0x790] sm:$0xff] %v1233_v9  ;;  %v1235_v19 = vpop.f32.mrb[149].mxu0 }
 0x237   :  { %v1504_v10 = vpop.f32.mrb[148].mxu1  ;;  %1776 = vst [vmem:[#allocation5 + $0x798] sm:$0xff] %v1235_v19 }
 0x238   :  { %1777 = vst.msk [vmem:[#allocation5 + $0x7a0] sm:$0xff] %vm232_vm0, %v1504_v10  ;;  %v1506_v25 = vpop.f32.mrb[149].mxu1 }
 0x239   :  { %v1239_v20 = vpop.f32.mrb[150].mxu0 }
 0x23a   :  { %1782 = vst [vmem:[#allocation5 + $0x7c8] sm:$0xff] %v1239_v20  ;;  %v1241_v26 = vpop.f32.mrb[151].mxu0 }
 0x23b   :  { %v1509_v12 = vpop.f32.mrb[150].mxu1  ;;  %1783 = vst [vmem:[#allocation5 + $0x7d0] sm:$0xff] %v1241_v26 }
 0x23c   :  { %1784 = vst.msk [vmem:[#allocation5 + $0x7d8] sm:$0xff] %vm232_vm0, %v1509_v12  ;;  %v1511_v15 = vpop.f32.mrb[151].mxu1 }
 0x23d   :  { %v1245_v24 = vpop.f32.mrb[152].mxu0 }
 0x23e   :  { %1789 = vst [vmem:[#allocation5 + $0x800] sm:$0xff] %v1245_v24  ;;  %v1247_v36 = vpop.f32.mrb[153].mxu0 }
 0x23f   :  { %v1514_v37 = vpop.f32.mrb[152].mxu1  ;;  %1790 = vst [vmem:[#allocation5 + $0x808] sm:$0xff] %v1247_v36 }
 0x240   :  { %1791 = vst.msk [vmem:[#allocation5 + $0x810] sm:$0xff] %vm232_vm0, %v1514_v37  ;;  %v1516_v47 = vpop.f32.mrb[153].mxu1 }
 0x241   :  { %v1251_v16 = vpop.f32.mrb[154].mxu0 }
 0x242   :  { %1796 = vst [vmem:[#allocation5 + $0x838] sm:$0xff] %v1251_v16  ;;  %v1253_v27 = vpop.f32.mrb[155].mxu0 }
 0x243   :  { %v1519_v17 = vpop.f32.mrb[154].mxu1  ;;  %1797 = vst [vmem:[#allocation5 + $0x840] sm:$0xff] %v1253_v27 }
 0x244   :  { %1798 = vst.msk [vmem:[#allocation5 + $0x848] sm:$0xff] %vm232_vm0, %v1519_v17  ;;  %v1521_v48 = vpop.f32.mrb[155].mxu1 }
 0x245   :  { %v1257_v61 = vpop.f32.mrb[156].mxu0 }
 0x246   :  { %1803 = vst [vmem:[#allocation5 + $0x870] sm:$0xff] %v1257_v61  ;;  %v1259_v62 = vpop.f32.mrb[157].mxu0 }
 0x247   :  { %v1524_v8 = vpop.f32.mrb[156].mxu1  ;;  %1804 = vst [vmem:[#allocation5 + $0x878] sm:$0xff] %v1259_v62 }
 0x248   :  { %1805 = vst.msk [vmem:[#allocation5 + $0x880] sm:$0xff] %vm232_vm0, %v1524_v8  ;;  %v1526_v18 = vpop.f32.mrb[157].mxu1 }
 0x249   :  { %v1263_v11 = vpop.f32.mrb[158].mxu0 }
 0x24a   :  { %1810 = vst [vmem:[#allocation5 + $0x8a8] sm:$0xff] %v1263_v11  ;;  %v1265_v21 = vpop.f32.mrb[159].mxu0 }
 0x24b   :  { %v1529_v22 = vpop.f32.mrb[158].mxu1  ;;  %1811 = vst [vmem:[#allocation5 + $0x8b0] sm:$0xff] %v1265_v21 }
 0x24c   :  { %1812 = vst.msk [vmem:[#allocation5 + $0x8b8] sm:$0xff] %vm232_vm0, %v1529_v22  ;;  %v1531_v28 = vpop.f32.mrb[159].mxu1 }
 0x24d   :  { %2163 = shalt.err (!%p2160_p12)
}
 0x24e   :  { %s2164_s24 = scalar_lea.hbm %s3159_s2, 35840 }
 0x24f   :  { %p2165_p13 = scmp.ne.s32.totalorder %s3159_s2, %s2164_s24  ;;  %p2168_p0 = scmp.lt.u32.totalorder %s2164_s24, %s3159_s2 }
 0x251   :  { %p2170_p1 = pnand %p2168_p0, %p2165_p13 }
 0x253   :  { %2173 = shalt.err (!%p2170_p1)
}
 0x254   :  { %1824 = dma.vmem_to_hbm [thread:$0]  %s1819_s21, 35840, %s3159_s2, [#allocation4], %s2179_s19, %s2179_s19, %s2180_s20  }
 0x255   :  { %2176 = dma.done.wait [#allocation4], 35840  }
 0x256   :  { %2177 = vsyncadd [#allocation4], 4294931456 }
 0x257   :  { %1828 = vsyncpa [#allocation3], 1 }
 0x258   :  { %1829 = vsyncpa [#allocation4], 1 }

</bundles_post_ra>
